<compile_context>
chip_gen: v7x
topology: tpu7x:2x2x1
jax: 0.10.0
libtpu: 0.0.40
codegen_flags: <defaults>
</compile_context>

<pallas_src>
import functools
import math

import jax
import jax.numpy as jnp
from jax import lax
from jax.experimental import pallas as pl
from jax.experimental.pallas import tpu as pltpu


# ----------------------------- in-kernel helpers ---------------------------- #

def _layernorm_f32(x_f32, g_ref, b_ref):
    mu = jnp.mean(x_f32, axis=-1, keepdims=True)
    var = jnp.mean(jnp.square(x_f32 - mu), axis=-1, keepdims=True)
    return ((x_f32 - mu) * lax.rsqrt(var + 1e-5) * g_ref[...].astype(jnp.float32)
            + b_ref[...].astype(jnp.float32))


def _mha_proj(q_scaled, k, v, wpr, *, num_heads, mxu_dtype):
    """softmax(q k^T) v @ w_proj with the projection accumulated per head.

    q_scaled: (TQ, C) (softmax scale already folded in), k/v: (Nkv, C),
    wpr: (C, C), all in mxu_dtype.  Returns (TQ, C) float32.
    No lane-axis concatenate: each head contributes oh @ wpr[h*hd:(h+1)*hd, :]
    (a sublane-aligned row slice, hd is a multiple of 8).
    """
    C = q_scaled.shape[-1]
    hd = C // num_heads
    dn = (((1,), (1,)), ((), ()))      # contract last axes == q @ k.T, no transpose
    acc = None
    for h in range(num_heads):
        sl = slice(h * hd, (h + 1) * hd)
        s = lax.dot_general(q_scaled[:, sl], k[:, sl], dn,
                            preferred_element_type=jnp.float32)
        m = jnp.max(s, axis=-1, keepdims=True)
        p = jnp.exp(s - m)
        inv = pl.reciprocal(jnp.sum(p, axis=-1, keepdims=True), approx=True)
        p = (p * inv).astype(mxu_dtype)
        oh = jnp.dot(p, v[:, sl], preferred_element_type=jnp.float32)
        contrib = jnp.dot(oh.astype(mxu_dtype), wpr[sl, :],
                          preferred_element_type=jnp.float32)
        acc = contrib if acc is None else acc + contrib
    return acc


# ------------------------------- fused kernels ------------------------------ #

def _fused_attn_sr_kernel(*refs, num_heads, scale, qkv_bias, mxu_dtype):
    """sr_ratio > 1: x tile (TQ, C) + patchified input (Nkv, Csr) per batch."""
    if qkv_bias:
        (x_ref, xp_ref, wq_ref, bq_ref, wsr_ref, bsr_ref, lng_ref, lnb_ref,
         wk_ref, wv_ref, bk_ref, bv_ref, wpr_ref, bpr_ref,
         o_ref, k_scr, v_scr) = refs
    else:
        (x_ref, xp_ref, wq_ref, wsr_ref, bsr_ref, lng_ref, lnb_ref,
         wk_ref, wv_ref, wpr_ref, bpr_ref,
         o_ref, k_scr, v_scr) = refs
        bq_ref = bk_ref = bv_ref = None

    qi = pl.program_id(1)

    # --- once per batch: Conv2d(k=s=sr) as patch matmul + LayerNorm + K/V ---
    @pl.when(qi == 0)
    def _():
        xp = xp_ref[...].astype(mxu_dtype)                                # (Nkv, Csr)
        xs = (jnp.dot(xp, wsr_ref[...].astype(mxu_dtype),
                      preferred_element_type=jnp.float32)
              + bsr_ref[...].astype(jnp.float32))                        # (Nkv, C)
        xs = _layernorm_f32(xs, lng_ref, lnb_ref).astype(mxu_dtype)
        k = jnp.dot(xs, wk_ref[...].astype(mxu_dtype),
                    preferred_element_type=jnp.float32)
        v = jnp.dot(xs, wv_ref[...].astype(mxu_dtype),
                    preferred_element_type=jnp.float32)
        if qkv_bias:
            k = k + bk_ref[...].astype(jnp.float32)
            v = v + bv_ref[...].astype(jnp.float32)
        k_scr[...] = k.astype(k_scr.dtype)
        v_scr[...] = v.astype(v_scr.dtype)

    # --- per query tile ---
    x = x_ref[...].astype(mxu_dtype)                                      # (TQ, C)
    q = jnp.dot(x, wq_ref[...].astype(mxu_dtype),
                preferred_element_type=jnp.float32)
    if qkv_bias:
        q = q + bq_ref[...].astype(jnp.float32)
    q = (q * scale).astype(mxu_dtype)                                     # fold scale once
    y = _mha_proj(q, k_scr[...], v_scr[...], wpr_ref[...].astype(mxu_dtype),
                  num_heads=num_heads, mxu_dtype=mxu_dtype)
    o_ref[...] = (y + bpr_ref[...].astype(jnp.float32)).astype(o_ref.dtype)


def _fused_attn_kernel(*refs, num_heads, scale, qkv_bias, mxu_dtype):
    """sr_ratio == 1: K/V computed once per batch from the full (N, C) block."""
    if qkv_bias:
        (x_ref, xfull_ref, wq_ref, bq_ref, wk_ref, wv_ref, bk_ref, bv_ref,
         wpr_ref, bpr_ref, o_ref, k_scr, v_scr) = refs
    else:
        (x_ref, xfull_ref, wq_ref, wk_ref, wv_ref, wpr_ref, bpr_ref,
         o_ref, k_scr, v_scr) = refs
        bq_ref = bk_ref = bv_ref = None

    qi = pl.program_id(1)

    @pl.when(qi == 0)
    def _():
        xf = xfull_ref[...].astype(mxu_dtype)                             # (N, C)
        k = jnp.dot(xf, wk_ref[...].astype(mxu_dtype),
                    preferred_element_type=jnp.float32)
        v = jnp.dot(xf, wv_ref[...].astype(mxu_dtype),
                    preferred_element_type=jnp.float32)
        if qkv_bias:
            k = k + bk_ref[...].astype(jnp.float32)
            v = v + bv_ref[...].astype(jnp.float32)
        k_scr[...] = k.astype(k_scr.dtype)
        v_scr[...] = v.astype(v_scr.dtype)

    x = x_ref[...].astype(mxu_dtype)                                      # (TQ, C)
    q = jnp.dot(x, wq_ref[...].astype(mxu_dtype),
                preferred_element_type=jnp.float32)
    if qkv_bias:
        q = q + bq_ref[...].astype(jnp.float32)
    q = (q * scale).astype(mxu_dtype)
    y = _mha_proj(q, k_scr[...], v_scr[...], wpr_ref[...].astype(mxu_dtype),
                  num_heads=num_heads, mxu_dtype=mxu_dtype)
    o_ref[...] = (y + bpr_ref[...].astype(jnp.float32)).astype(o_ref.dtype)


# -------------------------------- forward pass ------------------------------ #

def _pick_tq(n, want):
    """Largest multiple-of-8 divisor of n that is <= want (or n itself)."""
    want = min(want, n)
    if want >= n:
        return n
    want -= want % 8
    for t in range(want, 7, -8):
        if n % t == 0:
            return t
    return n


def attention_forward(params, x, H, W, *, num_heads, sr_ratio,
                      qkv_bias=False, tq=256, mxu_dtype=None):
    B, N, C = x.shape
    assert N == H * W and C % num_heads == 0
    hd = C // num_heads
    scale = hd ** (-0.5)
    mx = jnp.dtype(x.dtype if mxu_dtype is None else mxu_dtype)

    TQ = _pick_tq(N, tq)            # 256 is a good v7x default; 512-1024 on v5e/v6e
    grid = (B, N // TQ)

    def cw(w):                      # cast MXU operands host-side (once)
        return w if w.dtype == mx else w.astype(mx)

    wq = cw(params["wq"])
    wk = cw(params["wkv"][:, :C])   # split KV by weight -> no (Nkv, 2C) result slice
    wv = cw(params["wkv"][:, C:])
    wpr = cw(params["w_proj"])
    bpr = params["b_proj"]

    fixed = lambda shape: pl.BlockSpec(shape, lambda b, qi: (0, 0))
    x_tile_spec = pl.BlockSpec((None, TQ, C), lambda b, qi: (b, qi, 0))
    out_spec = pl.BlockSpec((None, TQ, C), lambda b, qi: (b, qi, 0))

    if sr_ratio > 1:
        Hr, Wr = H // sr_ratio, W // sr_ratio
        Nkv = Hr * Wr
        Csr = C * sr_ratio * sr_ratio
        # Channel-last patchify (minor dim C untouched) for the stride=kernel conv.
        # TODO(synk): fold into the kernel on v5e to avoid this x-sized HBM round-trip.
        xp = x.reshape(B, Hr, sr_ratio, Wr, sr_ratio, C)
        xp = jnp.transpose(xp, (0, 1, 3, 2, 4, 5)).reshape(B, Nkv, Csr)
        wsr = cw(params["w_sr"])

        args = [x, xp, wq]
        specs = [x_tile_spec,
                 pl.BlockSpec((None, Nkv, Csr), lambda b, qi: (b, 0, 0)),
                 fixed((C, C))]
        if qkv_bias:
            args += [params["bq"]]
            specs += [fixed((1, C))]
        args += [wsr, params["b_sr"], params["ln_g"], params["ln_b"], wk, wv]
        specs += [fixed((Csr, C)), fixed((1, C)), fixed((1, C)), fixed((1, C)),
                  fixed((C, C)), fixed((C, C))]
        if qkv_bias:
            args += [params["bkv"][:, :C], params["bkv"][:, C:]]
            specs += [fixed((1, C)), fixed((1, C))]
        args += [wpr, bpr]
        specs += [fixed((C, C)), fixed((1, C))]

        kern = functools.partial(_fused_attn_sr_kernel, num_heads=num_heads,
                                 scale=scale, qkv_bias=qkv_bias, mxu_dtype=mx)
        kv_rows = Nkv
        flops = 2 * B * (2 * N * C * C + Nkv * Csr * C + 2 * Nkv * C * C
                         + 2 * N * Nkv * C)
        transcendentals = B * num_heads * N * Nkv
    else:
        args = [x, x, wq]
        specs = [x_tile_spec,
                 pl.BlockSpec((None, N, C), lambda b, qi: (b, 0, 0)),
                 fixed((C, C))]
        if qkv_bias:
            args += [params["bq"]]
            specs += [fixed((1, C))]
        args += [wk, wv]
        specs += [fixed((C, C)), fixed((C, C))]
        if qkv_bias:
            args += [params["bkv"][:, :C], params["bkv"][:, C:]]
            specs += [fixed((1, C)), fixed((1, C))]
        args += [wpr, bpr]
        specs += [fixed((C, C)), fixed((1, C))]

        kern = functools.partial(_fused_attn_kernel, num_heads=num_heads,
                                 scale=scale, qkv_bias=qkv_bias, mxu_dtype=mx)
        kv_rows = N
        flops = 2 * B * (4 * N * C * C + 2 * N * N * C)
        transcendentals = B * num_heads * N * N

    # Advisory cost estimate so XLA can overlap neighbours with this kernel.
    bytes_accessed = (2 * x.size * x.dtype.itemsize
                      + args[1].size * args[1].dtype.itemsize
                      + sum(a.size * a.dtype.itemsize for a in args[2:]))
    cost = pl.CostEstimate(flops=int(flops), transcendentals=int(transcendentals),
                           bytes_accessed=int(bytes_accessed))

    # Explicit VMEM budget with headroom (v7x has only 64 MiB physical).
    item_x = x.dtype.itemsize
    wbytes = sum(a.size * a.dtype.itemsize for a in args[2:])
    kvsrc_bytes = (args[1].size // B) * args[1].dtype.itemsize
    est = (4 * TQ * C * item_x                    # x/out tiles, double-buffered
           + 2 * kvsrc_bytes + 2 * wbytes         # per-batch kv source + weights
           + 2 * kv_rows * C * mx.itemsize        # K/V scratch
           + 8 * TQ * C * 4 + 4 * TQ * kv_rows * 4)   # f32 intermediates
    vmem_limit = int(min(max(2 * est, 32 * 2**20), 64 * 2**20))

    return pl.pallas_call(
        kern,
        out_shape=jax.ShapeDtypeStruct((B, N, C), x.dtype),
        grid=grid,
        in_specs=specs,
        out_specs=out_spec,
        scratch_shapes=[pltpu.VMEM((kv_rows, C), mx),
                        pltpu.VMEM((kv_rows, C), mx)],
        compiler_params=pltpu.CompilerParams(
            dimension_semantics=("parallel", "arbitrary"),
            vmem_limit_bytes=vmem_limit),
        cost_estimate=cost,
    )(*args)


# ------------------------------ pure-JAX reference -------------------------- #

def attention_reference(params, x, H, W, *, num_heads, sr_ratio):
    B, N, C = x.shape
    hd = C // num_heads
    scale = hd ** (-0.5)
    q = x @ params["wq"]
    if "bq" in params:
        q = q + params["bq"]
    if sr_ratio > 1:
        x_img = jnp.transpose(x, (0, 2, 1)).reshape(B, C, H, W)
        y = lax.conv_general_dilated(
            x_img, params["w_conv"], window_strides=(sr_ratio, sr_ratio),
            padding="VALID", dimension_numbers=("NCHW", "OIHW", "NCHW"))
        y = y + params["b_sr"].reshape(1, C, 1, 1)
        x_ = jnp.transpose(y.reshape(B, C, -1), (0, 2, 1))
        mu = jnp.mean(x_, -1, keepdims=True)
        var = jnp.mean(jnp.square(x_ - mu), -1, keepdims=True)
        x_ = (x_ - mu) * lax.rsqrt(var + 1e-5) * params["ln_g"] + params["ln_b"]
    else:
        x_ = x
    kv = x_ @ params["wkv"]
    if "bkv" in params:
        kv = kv + params["bkv"]
    Nkv = kv.shape[1]
    kv = jnp.transpose(kv.reshape(B, Nkv, 2, num_heads, hd), (2, 0, 3, 1, 4))
    k, v = kv[0], kv[1]
    qh = jnp.transpose(q.reshape(B, N, num_heads, hd), (0, 2, 1, 3))
    s = jnp.einsum("bhnd,bhkd->bhnk", qh, k) * scale
    p = jax.nn.softmax(s, axis=-1)
    out = jnp.einsum("bhnk,bhkd->bhnd", p, v)
    out = jnp.transpose(out, (0, 2, 1, 3)).reshape(B, N, C)
    return out @ params["w_proj"] + params["b_proj"]


# ----------------------------------- params --------------------------------- #

def init_params(key, dim, num_heads, sr_ratio, qkv_bias=False):
    ks = jax.random.split(key, 4)
    p = {}
    p["wq"] = 0.02 * jax.random.truncated_normal(ks[0], -2.0, 2.0, (dim, dim), jnp.float32)
    p["wkv"] = 0.02 * jax.random.truncated_normal(ks[1], -2.0, 2.0, (dim, 2 * dim), jnp.float32)
    p["w_proj"] = 0.02 * jax.random.truncated_normal(ks[2], -2.0, 2.0, (dim, dim), jnp.float32)
    p["b_proj"] = jnp.zeros((1, dim), jnp.float32)
    if qkv_bias:
        p["bq"] = jnp.zeros((1, dim), jnp.float32)
        p["bkv"] = jnp.zeros((1, 2 * dim), jnp.float32)
    if sr_ratio > 1:
        fan_out = sr_ratio * sr_ratio * dim
        w_conv = math.sqrt(2.0 / fan_out) * jax.random.normal(
            ks[3], (dim, dim, sr_ratio, sr_ratio), jnp.float32)   # (out, in, kh, kw)
        p["w_conv"] = w_conv
        # matmul weight matching the (dh, dw, c) patch-feature layout
        p["w_sr"] = jnp.transpose(w_conv, (2, 3, 1, 0)).reshape(
            sr_ratio * sr_ratio * dim, dim)
        p["b_sr"] = jnp.zeros((1, dim), jnp.float32)
        p["ln_g"] = jnp.ones((1, dim), jnp.float32)
        p["ln_b"] = jnp.zeros((1, dim), jnp.float32)
    return p


# ------------------------------------ main ----------------------------------- #

if __name__ == "__main__":
    key = jax.random.PRNGKey(0)
    kx, kp = jax.random.split(key)

    B, dim, num_heads, sr_ratio = 2, 32, 4, 2
    H = W = 8
    N = H * W                                   # x: (B, N, C) with N = H*W

    x = jax.random.normal(kx, (B, N, dim), jnp.float32)
    params = init_params(kp, dim, num_heads, sr_ratio)

    # 1) sr_ratio > 1, f32 MXU operands, single query tile
    out = jax.block_until_ready(
        attention_forward(params, x, H, W, num_heads=num_heads, sr_ratio=sr_ratio))
    ref = attention_reference(params, x, H, W, num_heads=num_heads, sr_ratio=sr_ratio)
    assert out.shape == (B, N, dim)
    assert jnp.allclose(out, ref, atol=2e-3, rtol=2e-3), "sr>1 mismatch"

    # 2) same, but multiple query tiles (exercises per-batch KV scratch reuse)
    out_t = jax.block_until_ready(
        attention_forward(params, x, H, W, num_heads=num_heads, sr_ratio=sr_ratio, tq=16))
    assert jnp.allclose(out_t, ref, atol=2e-3, rtol=2e-3), "sr>1 tiled mismatch"

    # 3) sr_ratio == 1 path, tiled
    params1 = init_params(kp, dim, num_heads, 1)
    out1 = jax.block_until_ready(
        attention_forward(params1, x, H, W, num_heads=num_heads, sr_ratio=1, tq=16))
    ref1 = attention_reference(params1, x, H, W, num_heads=num_heads, sr_ratio=1)
    assert jnp.allclose(out1, ref1, atol=2e-3, rtol=2e-3), "sr==1 mismatch"

    # 4) qkv_bias=True plumbing (non-zero biases to exercise the adds)
    kb1, kb2 = jax.random.split(jax.random.PRNGKey(1))
    params_b = init_params(kp, dim, num_heads, sr_ratio, qkv_bias=True)
    params_b["bq"] = 0.05 * jax.random.normal(kb1, (1, dim), jnp.float32)
    params_b["bkv"] = 0.05 * jax.random.normal(kb2, (1, 2 * dim), jnp.float32)
    out_b = jax.block_until_ready(
        attention_forward(params_b, x, H, W, num_heads=num_heads,
                          sr_ratio=sr_ratio, qkv_bias=True))
    ref_b = attention_reference(params_b, x, H, W, num_heads=num_heads, sr_ratio=sr_ratio)
    assert jnp.allclose(out_b, ref_b, atol=2e-3, rtol=2e-3), "qkv_bias mismatch"

    # 5) bf16 MXU-operand path (v6e/v7x); f32 accumulation -> loose tolerance
    out_bf = jax.block_until_ready(
        attention_forward(params, x, H, W, num_heads=num_heads, sr_ratio=sr_ratio,
                          mxu_dtype=jnp.bfloat16))
    assert jnp.allclose(out_bf, ref, atol=5e-2, rtol=5e-2), "bf16 mismatch"

    print("KERNEL_OK")
</pallas_src>

<mosaic_0001>
module attributes {stable_mosaic.version = 11 : i64} {
  func.func @_fused_attn_sr_kernel(%arg0: i32, %arg1: i32, %arg2: memref<1x64x32xf32, #tpu.memory_space<vmem>>, %arg3: memref<1x16x128xf32, #tpu.memory_space<vmem>>, %arg4: memref<32x32xf32, #tpu.memory_space<vmem>>, %arg5: memref<128x32xf32, #tpu.memory_space<vmem>>, %arg6: memref<1x32xf32, #tpu.memory_space<vmem>>, %arg7: memref<1x32xf32, #tpu.memory_space<vmem>>, %arg8: memref<1x32xf32, #tpu.memory_space<vmem>>, %arg9: memref<32x32xf32, #tpu.memory_space<vmem>>, %arg10: memref<32x32xf32, #tpu.memory_space<vmem>>, %arg11: memref<32x32xf32, #tpu.memory_space<vmem>>, %arg12: memref<1x32xf32, #tpu.memory_space<vmem>>, %arg13: memref<1x64x32xf32, #tpu.memory_space<vmem>>, %arg14: memref<16x32xf32, #tpu.memory_space<vmem>>, %arg15: memref<16x32xf32, #tpu.memory_space<vmem>>) attributes {dimension_semantics = [#tpu.dimension_semantics<parallel>, #tpu.dimension_semantics<arbitrary>], iteration_bounds = array<i64: 2, 1>, scalar_prefetch = 0 : i64, scratch_operands = 2 : i64, tpu.core_type = #tpu.core_type<tc>, window_params = [{transform_indices = @transform_0, window_bounds = array<i64: 1, 64, 32>}, {transform_indices = @transform_1, window_bounds = array<i64: 1, 16, 128>}, {pipeline_mode = #tpu.pipeline_mode<synchronous>, transform_indices = @transform_2, window_bounds = array<i64: 32, 32>}, {pipeline_mode = #tpu.pipeline_mode<synchronous>, transform_indices = @transform_3, window_bounds = array<i64: 128, 32>}, {pipeline_mode = #tpu.pipeline_mode<synchronous>, transform_indices = @transform_4, window_bounds = array<i64: 1, 32>}, {pipeline_mode = #tpu.pipeline_mode<synchronous>, transform_indices = @transform_5, window_bounds = array<i64: 1, 32>}, {pipeline_mode = #tpu.pipeline_mode<synchronous>, transform_indices = @transform_6, window_bounds = array<i64: 1, 32>}, {pipeline_mode = #tpu.pipeline_mode<synchronous>, transform_indices = @transform_7, window_bounds = array<i64: 32, 32>}, {pipeline_mode = #tpu.pipeline_mode<synchronous>, transform_indices = @transform_8, window_bounds = array<i64: 32, 32>}, {pipeline_mode = #tpu.pipeline_mode<synchronous>, transform_indices = @transform_9, window_bounds = array<i64: 32, 32>}, {pipeline_mode = #tpu.pipeline_mode<synchronous>, transform_indices = @transform_10, window_bounds = array<i64: 1, 32>}, {transform_indices = @transform_11, window_bounds = array<i64: 1, 64, 32>}]} {
    %c0_i32 = arith.constant 0 : i32
    %0 = arith.cmpi eq, %arg1, %c0_i32 : i32
    %1 = arith.extui %0 : i1 to i32
    %c0_i32_0 = arith.constant 0 : i32
    %2 = arith.cmpi ne, %1, %c0_i32_0 : i32
    scf.if %2 {
      %c0_37 = arith.constant 0 : index
      %c0_38 = arith.constant 0 : index
      %c0_39 = arith.constant 0 : index
      %89 = vector.load %arg3[%c0_37, %c0_38, %c0_39] : memref<1x16x128xf32, #tpu.memory_space<vmem>>, vector<1x16x128xf32>
      %90 = vector.shape_cast %89 : vector<1x16x128xf32> to vector<16x128xf32>
      %c0_40 = arith.constant 0 : index
      %c0_41 = arith.constant 0 : index
      %91 = vector.load %arg5[%c0_40, %c0_41] : memref<128x32xf32, #tpu.memory_space<vmem>>, vector<128x32xf32>
      %cst_42 = arith.constant dense<0.000000e+00> : vector<16x32xf32>
      %92 = tpu.matmul %90, %91, %cst_42 {dimension_numbers = #tpu.dot_dimension_numbers<[1], [0], [0], [1], [0, 0, 1, 1], [], []>} : vector<16x128xf32>, vector<128x32xf32>, vector<16x32xf32> -> vector<16x32xf32>
      %c0_43 = arith.constant 0 : index
      %c0_44 = arith.constant 0 : index
      %93 = vector.load %arg6[%c0_43, %c0_44] : memref<1x32xf32, #tpu.memory_space<vmem>>, vector<1x32xf32>
      %94 = vector.broadcast %93 : vector<1x32xf32> to vector<16x32xf32>
      %95 = arith.addf %92, %94 : vector<16x32xf32>
      %cst_45 = arith.constant dense<0.000000e+00> : vector<16xf32>
      %96 = vector.multi_reduction <add>, %95, %cst_45 [1] : vector<16x32xf32> to vector<16xf32>
      %97 = vector.shape_cast %96 : vector<16xf32> to vector<16x1xf32>
      %cst_46 = arith.constant 3.200000e+01 : f32
      %98 = vector.broadcast %cst_46 : f32 to vector<16x1xf32>
      %99 = arith.divf %97, %98 : vector<16x1xf32>
      %100 = vector.broadcast %99 : vector<16x1xf32> to vector<16x32xf32>
      %101 = arith.subf %95, %100 : vector<16x32xf32>
      %102 = arith.mulf %101, %101 : vector<16x32xf32>
      %cst_47 = arith.constant dense<0.000000e+00> : vector<16xf32>
      %103 = vector.multi_reduction <add>, %102, %cst_47 [1] : vector<16x32xf32> to vector<16xf32>
      %104 = vector.shape_cast %103 : vector<16xf32> to vector<16x1xf32>
      %cst_48 = arith.constant 3.200000e+01 : f32
      %105 = vector.broadcast %cst_48 : f32 to vector<16x1xf32>
      %106 = arith.divf %104, %105 : vector<16x1xf32>
      %107 = vector.broadcast %99 : vector<16x1xf32> to vector<16x32xf32>
      %108 = arith.subf %95, %107 : vector<16x32xf32>
      %cst_49 = arith.constant 9.99999974E-6 : f32
      %109 = vector.broadcast %cst_49 : f32 to vector<16x1xf32>
      %110 = arith.addf %106, %109 : vector<16x1xf32>
      %111 = math.rsqrt %110 : vector<16x1xf32>
      %112 = vector.broadcast %111 : vector<16x1xf32> to vector<16x32xf32>
      %113 = arith.mulf %108, %112 : vector<16x32xf32>
      %c0_50 = arith.constant 0 : index
      %c0_51 = arith.constant 0 : index
      %114 = vector.load %arg7[%c0_50, %c0_51] : memref<1x32xf32, #tpu.memory_space<vmem>>, vector<1x32xf32>
      %115 = vector.broadcast %114 : vector<1x32xf32> to vector<16x32xf32>
      %116 = arith.mulf %113, %115 : vector<16x32xf32>
      %c0_52 = arith.constant 0 : index
      %c0_53 = arith.constant 0 : index
      %117 = vector.load %arg8[%c0_52, %c0_53] : memref<1x32xf32, #tpu.memory_space<vmem>>, vector<1x32xf32>
      %118 = vector.broadcast %117 : vector<1x32xf32> to vector<16x32xf32>
      %119 = arith.addf %116, %118 : vector<16x32xf32>
      %c0_54 = arith.constant 0 : index
      %c0_55 = arith.constant 0 : index
      %120 = vector.load %arg9[%c0_54, %c0_55] : memref<32x32xf32, #tpu.memory_space<vmem>>, vector<32x32xf32>
      %cst_56 = arith.constant dense<0.000000e+00> : vector<16x32xf32>
      %121 = tpu.matmul %119, %120, %cst_56 {dimension_numbers = #tpu.dot_dimension_numbers<[1], [0], [0], [1], [0, 0, 1, 1], [], []>} : vector<16x32xf32>, vector<32x32xf32>, vector<16x32xf32> -> vector<16x32xf32>
      %c0_57 = arith.constant 0 : index
      %c0_58 = arith.constant 0 : index
      %122 = vector.load %arg10[%c0_57, %c0_58] : memref<32x32xf32, #tpu.memory_space<vmem>>, vector<32x32xf32>
      %cst_59 = arith.constant dense<0.000000e+00> : vector<16x32xf32>
      %123 = tpu.matmul %119, %122, %cst_59 {dimension_numbers = #tpu.dot_dimension_numbers<[1], [0], [0], [1], [0, 0, 1, 1], [], []>} : vector<16x32xf32>, vector<32x32xf32>, vector<16x32xf32> -> vector<16x32xf32>
      %c0_60 = arith.constant 0 : index
      %c0_61 = arith.constant 0 : index
      %124 = vector.load %arg14[%c0_60, %c0_61] : memref<16x32xf32, #tpu.memory_space<vmem>>, vector<16x32xf32>
      tpu.vector_store %arg14[%c0_60, %c0_61], %121 {strides = array<i32>} : memref<16x32xf32, #tpu.memory_space<vmem>>, vector<16x32xf32>,
      %c0_62 = arith.constant 0 : index
      %c0_63 = arith.constant 0 : index
      %125 = vector.load %arg15[%c0_62, %c0_63] : memref<16x32xf32, #tpu.memory_space<vmem>>, vector<16x32xf32>
      tpu.vector_store %arg15[%c0_62, %c0_63], %123 {strides = array<i32>} : memref<16x32xf32, #tpu.memory_space<vmem>>, vector<16x32xf32>,
    } else {
    }
    %c0 = arith.constant 0 : index
    %c0_1 = arith.constant 0 : index
    %c0_2 = arith.constant 0 : index
    %3 = vector.load %arg2[%c0, %c0_1, %c0_2] : memref<1x64x32xf32, #tpu.memory_space<vmem>>, vector<1x64x32xf32>
    %4 = vector.shape_cast %3 : vector<1x64x32xf32> to vector<64x32xf32>
    %c0_3 = arith.constant 0 : index
    %c0_4 = arith.constant 0 : index
    %5 = vector.load %arg4[%c0_3, %c0_4] : memref<32x32xf32, #tpu.memory_space<vmem>>, vector<32x32xf32>
    %cst = arith.constant dense<0.000000e+00> : vector<64x32xf32>
    %6 = tpu.matmul %4, %5, %cst {dimension_numbers = #tpu.dot_dimension_numbers<[1], [0], [0], [1], [0, 0, 1, 1], [], []>} : vector<64x32xf32>, vector<32x32xf32>, vector<64x32xf32> -> vector<64x32xf32>
    %cst_5 = arith.constant 0.353553385 : f32
    %7 = vector.broadcast %cst_5 : f32 to vector<64x32xf32>
    %8 = arith.mulf %6, %7 : vector<64x32xf32>
    %c0_6 = arith.constant 0 : index
    %c0_7 = arith.constant 0 : index
    %9 = vector.load %arg14[%c0_6, %c0_7] : memref<16x32xf32, #tpu.memory_space<vmem>>, vector<16x32xf32>
    %c0_8 = arith.constant 0 : index
    %c0_9 = arith.constant 0 : index
    %10 = vector.load %arg15[%c0_8, %c0_9] : memref<16x32xf32, #tpu.memory_space<vmem>>, vector<16x32xf32>
    %c0_10 = arith.constant 0 : index
    %c0_11 = arith.constant 0 : index
    %11 = vector.load %arg11[%c0_10, %c0_11] : memref<32x32xf32, #tpu.memory_space<vmem>>, vector<32x32xf32>
    %12 = vector.extract_strided_slice %8 {offsets = [0, 0], sizes = [64, 8], strides = [1, 1]} : vector<64x32xf32> to vector<64x8xf32>
    %13 = vector.extract_strided_slice %9 {offsets = [0, 0], sizes = [16, 8], strides = [1, 1]} : vector<16x32xf32> to vector<16x8xf32>
    %cst_12 = arith.constant dense<0.000000e+00> : vector<64x16xf32>
    %14 = tpu.matmul %12, %13, %cst_12 {dimension_numbers = #tpu.dot_dimension_numbers<[1], [1], [0], [0], [0, 0, 1, 0], [], []>} : vector<64x8xf32>, vector<16x8xf32>, vector<64x16xf32> -> vector<64x16xf32>
    %cst_13 = arith.constant dense<0xFF800000> : vector<64xf32>
    %15 = vector.multi_reduction <maximumf>, %14, %cst_13 [1] : vector<64x16xf32> to vector<64xf32>
    %16 = vector.shape_cast %15 : vector<64xf32> to vector<64x1xf32>
    %17 = vector.broadcast %16 : vector<64x1xf32> to vector<64x16xf32>
    %18 = arith.subf %14, %17 : vector<64x16xf32>
    %19 = math.exp %18 : vector<64x16xf32>
    %cst_14 = arith.constant dense<0.000000e+00> : vector<64xf32>
    %20 = vector.multi_reduction <add>, %19, %cst_14 [1] : vector<64x16xf32> to vector<64xf32>
    %21 = vector.shape_cast %20 : vector<64xf32> to vector<64x1xf32>
    %22 = tpu.reciprocal %21 {approx = true} : vector<64x1xf32> -> vector<64x1xf32>
    %23 = vector.broadcast %22 : vector<64x1xf32> to vector<64x16xf32>
    %24 = arith.mulf %19, %23 : vector<64x16xf32>
    %25 = vector.extract_strided_slice %10 {offsets = [0, 0], sizes = [16, 8], strides = [1, 1]} : vector<16x32xf32> to vector<16x8xf32>
    %cst_15 = arith.constant dense<0.000000e+00> : vector<64x8xf32>
    %26 = tpu.matmul %24, %25, %cst_15 {dimension_numbers = #tpu.dot_dimension_numbers<[1], [0], [0], [1], [0, 0, 1, 1], [], []>} : vector<64x16xf32>, vector<16x8xf32>, vector<64x8xf32> -> vector<64x8xf32>
    %27 = vector.extract_strided_slice %11 {offsets = [0, 0], sizes = [8, 32], strides = [1, 1]} : vector<32x32xf32> to vector<8x32xf32>
    %cst_16 = arith.constant dense<0.000000e+00> : vector<64x32xf32>
    %28 = tpu.matmul %26, %27, %cst_16 {dimension_numbers = #tpu.dot_dimension_numbers<[1], [0], [0], [1], [0, 0, 1, 1], [], []>} : vector<64x8xf32>, vector<8x32xf32>, vector<64x32xf32> -> vector<64x32xf32>
    %29 = vector.extract_strided_slice %8 {offsets = [0, 8], sizes = [64, 8], strides = [1, 1]} : vector<64x32xf32> to vector<64x8xf32>
    %30 = vector.extract_strided_slice %9 {offsets = [0, 8], sizes = [16, 8], strides = [1, 1]} : vector<16x32xf32> to vector<16x8xf32>
    %cst_17 = arith.constant dense<0.000000e+00> : vector<64x16xf32>
    %31 = tpu.matmul %29, %30, %cst_17 {dimension_numbers = #tpu.dot_dimension_numbers<[1], [1], [0], [0], [0, 0, 1, 0], [], []>} : vector<64x8xf32>, vector<16x8xf32>, vector<64x16xf32> -> vector<64x16xf32>
    %cst_18 = arith.constant dense<0xFF800000> : vector<64xf32>
    %32 = vector.multi_reduction <maximumf>, %31, %cst_18 [1] : vector<64x16xf32> to vector<64xf32>
    %33 = vector.shape_cast %32 : vector<64xf32> to vector<64x1xf32>
    %34 = vector.broadcast %33 : vector<64x1xf32> to vector<64x16xf32>
    %35 = arith.subf %31, %34 : vector<64x16xf32>
    %36 = math.exp %35 : vector<64x16xf32>
    %cst_19 = arith.constant dense<0.000000e+00> : vector<64xf32>
    %37 = vector.multi_reduction <add>, %36, %cst_19 [1] : vector<64x16xf32> to vector<64xf32>
    %38 = vector.shape_cast %37 : vector<64xf32> to vector<64x1xf32>
    %39 = tpu.reciprocal %38 {approx = true} : vector<64x1xf32> -> vector<64x1xf32>
    %40 = vector.broadcast %39 : vector<64x1xf32> to vector<64x16xf32>
    %41 = arith.mulf %36, %40 : vector<64x16xf32>
    %42 = vector.extract_strided_slice %10 {offsets = [0, 8], sizes = [16, 8], strides = [1, 1]} : vector<16x32xf32> to vector<16x8xf32>
    %cst_20 = arith.constant dense<0.000000e+00> : vector<64x8xf32>
    %43 = tpu.matmul %41, %42, %cst_20 {dimension_numbers = #tpu.dot_dimension_numbers<[1], [0], [0], [1], [0, 0, 1, 1], [], []>} : vector<64x16xf32>, vector<16x8xf32>, vector<64x8xf32> -> vector<64x8xf32>
    %44 = vector.extract_strided_slice %11 {offsets = [8, 0], sizes = [8, 32], strides = [1, 1]} : vector<32x32xf32> to vector<8x32xf32>
    %cst_21 = arith.constant dense<0.000000e+00> : vector<64x32xf32>
    %45 = tpu.matmul %43, %44, %cst_21 {dimension_numbers = #tpu.dot_dimension_numbers<[1], [0], [0], [1], [0, 0, 1, 1], [], []>} : vector<64x8xf32>, vector<8x32xf32>, vector<64x32xf32> -> vector<64x32xf32>
    %46 = arith.addf %28, %45 : vector<64x32xf32>
    %47 = vector.extract_strided_slice %8 {offsets = [0, 16], sizes = [64, 8], strides = [1, 1]} : vector<64x32xf32> to vector<64x8xf32>
    %48 = vector.extract_strided_slice %9 {offsets = [0, 16], sizes = [16, 8], strides = [1, 1]} : vector<16x32xf32> to vector<16x8xf32>
    %cst_22 = arith.constant dense<0.000000e+00> : vector<64x16xf32>
    %49 = tpu.matmul %47, %48, %cst_22 {dimension_numbers = #tpu.dot_dimension_numbers<[1], [1], [0], [0], [0, 0, 1, 0], [], []>} : vector<64x8xf32>, vector<16x8xf32>, vector<64x16xf32> -> vector<64x16xf32>
    %cst_23 = arith.constant dense<0xFF800000> : vector<64xf32>
    %50 = vector.multi_reduction <maximumf>, %49, %cst_23 [1] : vector<64x16xf32> to vector<64xf32>
    %51 = vector.shape_cast %50 : vector<64xf32> to vector<64x1xf32>
    %52 = vector.broadcast %51 : vector<64x1xf32> to vector<64x16xf32>
    %53 = arith.subf %49, %52 : vector<64x16xf32>
    %54 = math.exp %53 : vector<64x16xf32>
    %cst_24 = arith.constant dense<0.000000e+00> : vector<64xf32>
    %55 = vector.multi_reduction <add>, %54, %cst_24 [1] : vector<64x16xf32> to vector<64xf32>
    %56 = vector.shape_cast %55 : vector<64xf32> to vector<64x1xf32>
    %57 = tpu.reciprocal %56 {approx = true} : vector<64x1xf32> -> vector<64x1xf32>
    %58 = vector.broadcast %57 : vector<64x1xf32> to vector<64x16xf32>
    %59 = arith.mulf %54, %58 : vector<64x16xf32>
    %60 = vector.extract_strided_slice %10 {offsets = [0, 16], sizes = [16, 8], strides = [1, 1]} : vector<16x32xf32> to vector<16x8xf32>
    %cst_25 = arith.constant dense<0.000000e+00> : vector<64x8xf32>
    %61 = tpu.matmul %59, %60, %cst_25 {dimension_numbers = #tpu.dot_dimension_numbers<[1], [0], [0], [1], [0, 0, 1, 1], [], []>} : vector<64x16xf32>, vector<16x8xf32>, vector<64x8xf32> -> vector<64x8xf32>
    %62 = vector.extract_strided_slice %11 {offsets = [16, 0], sizes = [8, 32], strides = [1, 1]} : vector<32x32xf32> to vector<8x32xf32>
    %cst_26 = arith.constant dense<0.000000e+00> : vector<64x32xf32>
    %63 = tpu.matmul %61, %62, %cst_26 {dimension_numbers = #tpu.dot_dimension_numbers<[1], [0], [0], [1], [0, 0, 1, 1], [], []>} : vector<64x8xf32>, vector<8x32xf32>, vector<64x32xf32> -> vector<64x32xf32>
    %64 = arith.addf %46, %63 : vector<64x32xf32>
    %65 = vector.extract_strided_slice %8 {offsets = [0, 24], sizes = [64, 8], strides = [1, 1]} : vector<64x32xf32> to vector<64x8xf32>
    %66 = vector.extract_strided_slice %9 {offsets = [0, 24], sizes = [16, 8], strides = [1, 1]} : vector<16x32xf32> to vector<16x8xf32>
    %cst_27 = arith.constant dense<0.000000e+00> : vector<64x16xf32>
    %67 = tpu.matmul %65, %66, %cst_27 {dimension_numbers = #tpu.dot_dimension_numbers<[1], [1], [0], [0], [0, 0, 1, 0], [], []>} : vector<64x8xf32>, vector<16x8xf32>, vector<64x16xf32> -> vector<64x16xf32>
    %cst_28 = arith.constant dense<0xFF800000> : vector<64xf32>
    %68 = vector.multi_reduction <maximumf>, %67, %cst_28 [1] : vector<64x16xf32> to vector<64xf32>
    %69 = vector.shape_cast %68 : vector<64xf32> to vector<64x1xf32>
    %70 = vector.broadcast %69 : vector<64x1xf32> to vector<64x16xf32>
    %71 = arith.subf %67, %70 : vector<64x16xf32>
    %72 = math.exp %71 : vector<64x16xf32>
    %cst_29 = arith.constant dense<0.000000e+00> : vector<64xf32>
    %73 = vector.multi_reduction <add>, %72, %cst_29 [1] : vector<64x16xf32> to vector<64xf32>
    %74 = vector.shape_cast %73 : vector<64xf32> to vector<64x1xf32>
    %75 = tpu.reciprocal %74 {approx = true} : vector<64x1xf32> -> vector<64x1xf32>
    %76 = vector.broadcast %75 : vector<64x1xf32> to vector<64x16xf32>
    %77 = arith.mulf %72, %76 : vector<64x16xf32>
    %78 = vector.extract_strided_slice %10 {offsets = [0, 24], sizes = [16, 8], strides = [1, 1]} : vector<16x32xf32> to vector<16x8xf32>
    %cst_30 = arith.constant dense<0.000000e+00> : vector<64x8xf32>
    %79 = tpu.matmul %77, %78, %cst_30 {dimension_numbers = #tpu.dot_dimension_numbers<[1], [0], [0], [1], [0, 0, 1, 1], [], []>} : vector<64x16xf32>, vector<16x8xf32>, vector<64x8xf32> -> vector<64x8xf32>
    %80 = vector.extract_strided_slice %11 {offsets = [24, 0], sizes = [8, 32], strides = [1, 1]} : vector<32x32xf32> to vector<8x32xf32>
    %cst_31 = arith.constant dense<0.000000e+00> : vector<64x32xf32>
    %81 = tpu.matmul %79, %80, %cst_31 {dimension_numbers = #tpu.dot_dimension_numbers<[1], [0], [0], [1], [0, 0, 1, 1], [], []>} : vector<64x8xf32>, vector<8x32xf32>, vector<64x32xf32> -> vector<64x32xf32>
    %82 = arith.addf %64, %81 : vector<64x32xf32>
    %c0_32 = arith.constant 0 : index
    %c0_33 = arith.constant 0 : index
    %83 = vector.load %arg12[%c0_32, %c0_33] : memref<1x32xf32, #tpu.memory_space<vmem>>, vector<1x32xf32>
    %84 = vector.broadcast %83 : vector<1x32xf32> to vector<64x32xf32>
    %85 = arith.addf %82, %84 : vector<64x32xf32>
    %c0_34 = arith.constant 0 : index
    %c0_35 = arith.constant 0 : index
    %c0_36 = arith.constant 0 : index
    %86 = vector.load %arg13[%c0_34, %c0_35, %c0_36] : memref<1x64x32xf32, #tpu.memory_space<vmem>>, vector<1x64x32xf32>
    %87 = vector.shape_cast %86 : vector<1x64x32xf32> to vector<64x32xf32>
    %88 = vector.shape_cast %85 : vector<64x32xf32> to vector<1x64x32xf32>
    tpu.vector_store %arg13[%c0_34, %c0_35, %c0_36], %88 {strides = array<i32>} : memref<1x64x32xf32, #tpu.memory_space<vmem>>, vector<1x64x32xf32>,
    return
  }
  func.func @transform_0(%arg0: i32, %arg1: i32) -> (i32, i32, i32) {
    %c0_i32 = arith.constant 0 : i32
    %c0_i32_0 = arith.constant 0 : i32
    return %arg0, %arg1, %c0_i32 : i32, i32, i32
  }
  func.func @transform_1(%arg0: i32, %arg1: i32) -> (i32, i32, i32) {
    %c0_i32 = arith.constant 0 : i32
    %c0_i32_0 = arith.constant 0 : i32
    %c0_i32_1 = arith.constant 0 : i32
    return %arg0, %c0_i32, %c0_i32_0 : i32, i32, i32
  }
  func.func @transform_2(%arg0: i32, %arg1: i32) -> (i32, i32) {
    %c0_i32 = arith.constant 0 : i32
    %c0_i32_0 = arith.constant 0 : i32
    %c0_i32_1 = arith.constant 0 : i32
    return %c0_i32, %c0_i32_0 : i32, i32
  }
  func.func @transform_3(%arg0: i32, %arg1: i32) -> (i32, i32) {
    %c0_i32 = arith.constant 0 : i32
    %c0_i32_0 = arith.constant 0 : i32
    %c0_i32_1 = arith.constant 0 : i32
    return %c0_i32, %c0_i32_0 : i32, i32
  }
  func.func @transform_4(%arg0: i32, %arg1: i32) -> (i32, i32) {
    %c0_i32 = arith.constant 0 : i32
    %c0_i32_0 = arith.constant 0 : i32
    %c0_i32_1 = arith.constant 0 : i32
    return %c0_i32, %c0_i32_0 : i32, i32
  }
  func.func @transform_5(%arg0: i32, %arg1: i32) -> (i32, i32) {
    %c0_i32 = arith.constant 0 : i32
    %c0_i32_0 = arith.constant 0 : i32
    %c0_i32_1 = arith.constant 0 : i32
    return %c0_i32, %c0_i32_0 : i32, i32
  }
  func.func @transform_6(%arg0: i32, %arg1: i32) -> (i32, i32) {
    %c0_i32 = arith.constant 0 : i32
    %c0_i32_0 = arith.constant 0 : i32
    %c0_i32_1 = arith.constant 0 : i32
    return %c0_i32, %c0_i32_0 : i32, i32
  }
  func.func @transform_7(%arg0: i32, %arg1: i32) -> (i32, i32) {
    %c0_i32 = arith.constant 0 : i32
    %c0_i32_0 = arith.constant 0 : i32
    %c0_i32_1 = arith.constant 0 : i32
    return %c0_i32, %c0_i32_0 : i32, i32
  }
  func.func @transform_8(%arg0: i32, %arg1: i32) -> (i32, i32) {
    %c0_i32 = arith.constant 0 : i32
    %c0_i32_0 = arith.constant 0 : i32
    %c0_i32_1 = arith.constant 0 : i32
    return %c0_i32, %c0_i32_0 : i32, i32
  }
  func.func @transform_9(%arg0: i32, %arg1: i32) -> (i32, i32) {
    %c0_i32 = arith.constant 0 : i32
    %c0_i32_0 = arith.constant 0 : i32
    %c0_i32_1 = arith.constant 0 : i32
    return %c0_i32, %c0_i32_0 : i32, i32
  }
  func.func @transform_10(%arg0: i32, %arg1: i32) -> (i32, i32) {
    %c0_i32 = arith.constant 0 : i32
    %c0_i32_0 = arith.constant 0 : i32
    %c0_i32_1 = arith.constant 0 : i32
    return %c0_i32, %c0_i32_0 : i32, i32
  }
  func.func @transform_11(%arg0: i32, %arg1: i32) -> (i32, i32, i32) {
    %c0_i32 = arith.constant 0 : i32
    %c0_i32_0 = arith.constant 0 : i32
    return %arg0, %arg1, %c0_i32 : i32, i32, i32
  }
}

</mosaic_0001>

<bundles_post_ra>
// kernel: tpu_custom_call.1
= control target key start
LH: loop header
LB: loop body
LE: loop exit
PB: predicated region body
PF: predicated region fallthrough
CT: control target
= control target key end

     0   :  { %s3987_s17 = smov 0   ;;  %s3989_s18 = smov 0   ;;  %s4565_s0 = inlined_call_operand.vmem [shape: f32[2,64,32], index: 0, kind: input, shape index: {}]   ;;  %s4566_s1 = inlined_call_operand.vmem [shape: f32[2,16,128], index: 1, kind: input, shape index: {}]   ;;  %s4567_s2 = inlined_call_operand.vmem [shape: f32[32,32], index: 2, kind: input, shape index: {}]   ;;  %s4568_s3 = inlined_call_operand.vmem [shape: f32[128,32], index: 3, kind: input, shape index: {}]   ;;  %s4569_s4 = inlined_call_operand.vmem [shape: f32[1,32], index: 4, kind: input, shape index: {}]   ;;  %s4570_s5 = inlined_call_operand.vmem [shape: f32[1,32], index: 5, kind: input, shape index: {}]   ;;  %s4571_s6 = inlined_call_operand.vmem [shape: f32[1,32], index: 6, kind: input, shape index: {}]   ;;  %s4572_s7 = inlined_call_operand.vmem [shape: f32[32,32], index: 7, kind: input, shape index: {}]   ;;  %s4573_s8 = inlined_call_operand.vmem [shape: f32[32,32], index: 8, kind: input, shape index: {}]   ;;  %s4574_s9 = inlined_call_operand.vmem [shape: f32[32,32], index: 9, kind: input, shape index: {}]   ;;  %s4575_s10 = inlined_call_operand.vmem [shape: f32[1,32], index: 10, kind: input, shape index: {}]   ;;  %s4576_s11 = inlined_call_operand.vmem [shape: f32[2,64,32], index: 11, kind: output, shape index: {}]  }
   0x1   :  { %s3991_s19 = smov 0  }
   0x2 LB: > { %s33_s20 = sadd.s32 1, %s3918_s18  ;;  %p3040_p0 = scmp.ge.s32.totalorder %s3922_s19, 1  ;;  %s3922_s19 = sphi %s3991_s19, %s21_s19   ;;  %s3918_s18 = sphi %s3989_s18, %s4580_s18   ;;  %s3914_s17 = sphi %s3987_s17, %s4579_s17  }
   0x3   : > { %p35_p1 = scmp.ge.s32.totalorder %s33_s20, 2  ;;  %p368_p2 = scmp.lt.s32.totalorder %s3922_s19, 3 }
   0x5   : > { %s4582_s20 = smov (%p35_p1, %s33_s20), 0  ;;  %p369_p3 = pnand %p3040_p0, %p368_p2 }
   0x6   : > { %v452_v0 = vld [vmem:[%s4568_s3] sm:$0xff] (!%p369_p3)  ;;  %v453_v1 = vld [vmem:[%s4568_s3 + $0x8] sm:$0xff] (!%p369_p3)  ;;  %v454_v2 = vld [vmem:[%s4568_s3 + $0x10] sm:$0xff] (!%p369_p3)  ;;  %p422_p4 = scmp.lt.s32.totalorder (!%p369_p3), %s3914_s17, 1  ;;  %vm550_vm0 = vcmask (!%p369_p3), 261120   ;;  %vm922_vm1 = vcmask (!%p369_p3), 64512  }
   0x7   : > { %372 = sbr.rel (%p369_p3) target bundleno = 3099 (0xc1b), region = 64  ;;  %v3591_v3 = vpack.c.bf16 (!%p369_p3), %v453_v1, %v452_v0  ;;  %v455_v4 = vld [vmem:[%s4568_s3 + $0x18] sm:$0xff] (!%p369_p3)  ;;  %v456_v6 = vld [vmem:[%s4568_s3 + $0x20] sm:$0xff] (!%p369_p3)  ;;  %v457_v7 = vld [vmem:[%s4568_s3 + $0x28] sm:$0xff] (!%p369_p3)  ;;  %s3924_s12 = smov (!%p369_p3), 120   ;;  %vm1058_vm3 = vcmask (!%p369_p3), 130048  }
   0x8   : > { %v3595_v5 = vpack.c.bf16 (!%p369_p3), %v455_v4, %v454_v2  ;;  %v3599_v8 = vpack.c.bf16 (!%p369_p3), %v457_v7, %v456_v6  ;;  %v458_v9 = vld [vmem:[%s4568_s3 + $0x30] sm:$0xff] (!%p369_p3)  ;;  %v459_v10 = vld [vmem:[%s4568_s3 + $0x38] sm:$0xff] (!%p369_p3)  ;;  %v460_v13 = vld [vmem:[%s4568_s3 + $0x40] sm:$0xff] (!%p369_p3)  ;;  %s3925_s13 = smov (!%p369_p3), 112   ;;  %s3926_s23 = smov (!%p369_p3), 104  }
   0x9   : > { %3592 = vmatprep.subr.bf16.mxu0 (!%p369_p3), %v3591_v3  ;;  %v3603_v12 = vpack.c.bf16 (!%p369_p3), %v459_v10, %v458_v9  ;;  %v461_v14 = vld [vmem:[%s4568_s3 + $0x48] sm:$0xff] (!%p369_p3)  ;;  %v462_v16 = vld [vmem:[%s4568_s3 + $0x50] sm:$0xff] (!%p369_p3)  ;;  %v463_v17 = vld [vmem:[%s4568_s3 + $0x58] sm:$0xff] (!%p369_p3) }
   0xa   : > { %3594 = vmatpush3.bf16.msra.mxu0 (!%p369_p3), %v3591_v3  ;;  %v3607_v15 = vpack.c.bf16 (!%p369_p3), %v461_v14, %v460_v13  ;;  %v3611_v18 = vpack.c.bf16 (!%p369_p3), %v463_v17, %v462_v16  ;;  %v464_v19 = vld [vmem:[%s4568_s3 + $0x60] sm:$0xff] (!%p369_p3)  ;;  %v465_v20 = vld [vmem:[%s4568_s3 + $0x68] sm:$0xff] (!%p369_p3)  ;;  %v466_v22 = vld [vmem:[%s4568_s3 + $0x70] sm:$0xff] (!%p369_p3) }
   0xb   : > { %3596 = vmatprep.subr.bf16.mxu0 (!%p369_p3), %v3595_v5  ;;  %v3615_v21 = vpack.c.bf16 (!%p369_p3), %v465_v20, %v464_v19  ;;  %v467_v23 = vld [vmem:[%s4568_s3 + $0x78] sm:$0xff] (!%p369_p3)  ;;  %v3047_v26 = vld [vmem:[%s4569_s4] ss:$0 sm:$0xff] (!%p369_p3)  ;;  %v597_v44 = vld [vmem:[%s4572_s7 + $0x8] sm:$0xff] (!%p369_p3) }
   0xc   : > { %v3619_v24 = vpack.c.bf16 (!%p369_p3), %v467_v23, %v466_v22  ;;  %v596_v43 = vld [vmem:[%s4572_s7] sm:$0xff] (!%p369_p3)  ;;  %v598_v45 = vld [vmem:[%s4572_s7 + $0x10] sm:$0xff] (!%p369_p3)  ;;  %v599_v47 = vld [vmem:[%s4572_s7 + $0x18] sm:$0xff] (!%p369_p3) }
   0xd   : > { %v3623_v46 = vpack.c.bf16 (!%p369_p3), %v597_v44, %v596_v43  ;;  %v3627_v48 = vpack.c.bf16 (!%p369_p3), %v599_v47, %v598_v45  ;;  %v681_v49 = vld [vmem:[%s4573_s8] sm:$0xff] (!%p369_p3)  ;;  %v682_v50 = vld [vmem:[%s4573_s8 + $0x8] sm:$0xff] (!%p369_p3)  ;;  %v683_v2 = vld [vmem:[%s4573_s8 + $0x10] sm:$0xff] (!%p369_p3) }
   0xe   : > { %s4584_s17 = smov (!%p422_p4, %s3914_s17), 1  ;;  %3598 = vmatpush3.bf16.msra.mxu0 %v3595_v5  ;;  %v3631_v51 = vpack.c.bf16 %v682_v50, %v681_v49  ;;  %v3048_v59 = vld [vmem:[%s4570_s5] ss:$0 sm:$0xff]  ;;  %v684_v3 = vld [vmem:[%s4573_s8 + $0x18] sm:$0xff]  ;;  %v774_v10 = vld [vmem:[%s4567_s2 + $0x10] sm:$0xff] }
   0xf   : > { %s3170_s14 = sshll.u32 %s4584_s17, 4  ;;  %3600 = vmatprep.subr.bf16.mxu0 %v3599_v8  ;;  %3624 = vmatprep.subr.bf16.mxu1 %v3623_v46  ;;  %v3049_v61 = vld [vmem:[%s4571_s6] ss:$0 sm:$0xff]  ;;  %v3635_v6 = vpack.c.bf16 %v684_v3, %v683_v2  ;;  %s3169_s24 = sshll.u32 %s4584_s17, 6  ;;  %vm4135_vm2 = vmpackc.low %vm922_vm1, %vm922_vm1 }
  0x10   : > { %s4029_s21 = scalar_lea.vmem %s4566_s1, %s3170_s14  ;;  %3626 = vmatpush3.bf16.msra.mxu1 %v3623_v46  ;;  %v772_v7 = vld [vmem:[%s4567_s2] sm:$0xff]  ;;  %s429_s27 = scalar_lea.vmem %s4565_s0, %s3169_s24 }
  0x11   : > { %v450_v11 = vld [vmem:[%s4029_s21] sm:$0xff]  ;;  %v451_v25 = vld [vmem:[%s4029_s21 + $0x8] sm:$0xff]  ;;  %3628 = vmatprep.subr.bf16.mxu1 %v3627_v48  ;;  %v767_v16 = vld [vmem:[%s429_s27 + $0x18] sm:$0xff] }
  0x12   : > { %3362 = vmatprep.mubr.f32.mxu0 %v450_v11  ;;  %3602 = vmatpush3.bf16.msra.mxu0 %v3599_v8  ;;  %v773_v8 = vld [vmem:[%s4567_s2 + $0x8] sm:$0xff]  ;;  %v775_v11 = vld [vmem:[%s4567_s2 + $0x18] sm:$0xff]  ;;  %v764_v13 = vld [vmem:[%s429_s27] sm:$0xff] }
  0x13   : > { %3604 = vmatprep.subr.bf16.mxu0 %v3603_v12  ;;  %v3639_v9 = vpack.c.bf16 %v773_v8, %v772_v7  ;;  %v765_v14 = vld [vmem:[%s429_s27 + $0x8] sm:$0xff]  ;;  %v768_v17 = vld [vmem:[%s429_s27 + $0x20] sm:$0xff]  ;;  %v770_v19 = vld [vmem:[%s429_s27 + $0x30] sm:$0xff] }
  0x14   : > { %3630 = vmatpush3.bf16.msra.mxu1 %v3627_v48  ;;  %v771_v20 = vld [vmem:[%s429_s27 + $0x38] sm:$0xff] }
  0x15   : > { %3632 = vmatprep.subr.bf16.mxu1 %v3631_v51 }
  0x16   : > { %3606 = vmatpush3.bf16.msra.mxu0 %v3603_v12  ;;  %v3643_v12 = vpack.c.bf16 %v775_v11, %v774_v10 }
  0x17   : > { %3608 = vmatprep.subr.bf16.mxu0 %v3607_v15 }
  0x1a   : > { %3610 = vmatpush3.bf16.msra.mxu0 %v3607_v15  ;;  %v766_v15 = vld [vmem:[%s429_s27 + $0x10] sm:$0xff] }
  0x1b   : > { %3612 = vmatprep.subr.bf16.mxu0 %v3611_v18 }
  0x1e   : > { %3614 = vmatpush3.bf16.msra.mxu0 %v3611_v18  ;;  %v769_v18 = vld [vmem:[%s429_s27 + $0x28] sm:$0xff] }
  0x1f   : > { %3616 = vmatprep.subr.bf16.mxu0 %v3615_v21 }
  0x22   : > { %3618 = vmatpush3.bf16.msra.mxu0 %v3615_v21 }
  0x23   : > { %3620 = vmatprep.subr.bf16.mxu0 %v3619_v24 }
  0x26   : > { %3622 = vmatpush3.bf16.msra.mxu0 %v3619_v24 }
  0x29   : > { %3363 = vmatmul.mubr.f32.vlgmr.msra.gmra.mrb[0].mxu0 %v451_v25 }
  0xfc   : > { %v3364_v27 = vpop.f32.mrb[0].mxu0 }
  0xfd   : > { %v541_v28 = vpop.f32.mrb[1].mxu0  ;;  %v547_v30 = vadd.f32 %v3364_v27, %v3047_v26 }
  0xfe   : > { %v542_v29 = vadd.f32 %v3047_v26, %v541_v28 }
  0xff   : > { %v554_v32 = vsel %vm550_vm0, %v547_v30, 0.0 }
 0x100   : > { %v551_v31 = vsel %vm550_vm0, %v542_v29, 0.0 }
 0x101   : > { %552 = vadd.xlane.f32.xlu0 %v551_v31 }
 0x105   : > { %555 = vadd.xlane.f32.xlu0 %v554_v32 }
 0x18e   : > { %v553_v33 = vpop.xlane.xlu0 %552 }
 0x18f   : > { %v558_v34 = vmul.f32 0.03125, %v553_v33 }
 0x191   : > { %v560_v35 = vsub.f32 %v542_v29, %v558_v34 }
 0x192   : > { %v556_v36 = vpop.xlane.xlu0 %555 }
 0x193   : > { %v559_v37 = vmul.f32 0.03125, %v556_v36  ;;  %v562_v38 = vmul.f32 %v560_v35, %v560_v35 }
 0x195   : > { %v561_v39 = vsub.f32 %v547_v30, %v559_v37  ;;  %v564_v40 = vsel %vm550_vm0, %v562_v38, 0.0 }
 0x196   : > { %565 = vadd.xlane.f32.xlu1 %v564_v40 }
 0x197   : > { %v563_v41 = vmul.f32 %v561_v39, %v561_v39 }
 0x199   : > { %v567_v42 = vsel %vm550_vm0, %v563_v41, 0.0 }
 0x19a   : > { %568 = vadd.xlane.f32.xlu1 %v567_v42 }
 0x223   : > { %v566_v52 = vpop.xlane.xlu1 %565 }
 0x224   : > { %v570_v53 = vmul.f32 0.03125, %v566_v52 }
 0x226   : > { %v572_v54 = vadd.f32 1e-05, %v570_v53 }
 0x227   : > { %v569_v55 = vpop.xlane.xlu1 %568 }
 0x228   : > { %3768 = vrsqrt.f32 %v572_v54  ;;  %v571_v56 = vmul.f32 0.03125, %v569_v55 }
 0x22a   : > { %v573_v57 = vadd.f32 1e-05, %v571_v56 }
 0x22c   : > { %3770 = vrsqrt.f32 %v573_v57 }
 0x232   : > { %v3769_v58 = vpop.eup %3768 }
 0x233   : > { %v576_v60 = vmul.f32 %v3769_v58, %v560_v35 }
 0x235   : > { %v585_v62 = vmul.f32 %v3048_v59, %v576_v60 }
 0x236   : > { %v3771_v63 = vpop.eup %3770 }
 0x237   : > { %v577_v0 = vmul.f32 %v3771_v63, %v561_v39  ;;  %v594_v1 = vadd.f32 %v3049_v61, %v585_v62 }
 0x239   : > { %v586_v4 = vmul.f32 %v3048_v59, %v577_v0  ;;  %3373 = vmatprep.mubr.msk.f32.mxu1 %vm550_vm0, %v594_v1 }
 0x23b   : > { %v595_v5 = vadd.f32 %v3049_v61, %v586_v4 }
 0x23d   : > { %3374 = vmatmul.mubr.msk.f32.vlgmr.msra.gmra.mrb[0].mxu1 %vm550_vm0, %v595_v5 }
 0x23e   : > { %3634 = vmatpush3.bf16.msra.mxu1 %v3631_v51  ;;  %3384 = vmatprep.mubr.msk.f32.mxu1 %vm550_vm0, %v594_v1 }
 0x23f   : > { %3636 = vmatprep.subr.bf16.mxu1 %v3635_v6 }
 0x242   : > { %3638 = vmatpush3.bf16.msra.mxu1 %v3635_v6 }
 0x243   : > { %3640 = vmatprep.subr.bf16.mxu1 %v3639_v9 }
 0x245   : > { %3385 = vmatmul.mubr.msk.f32.vlgmr.msra.gmra.mrb[2].mxu1 %vm550_vm0, %v595_v5 }
 0x246   : > { %3642 = vmatpush3.bf16.msra.mxu1 %v3639_v9  ;;  %3395 = vmatprep.mubr.msk.f32.mxu1 %vm550_vm0, %v764_v13 }
 0x247   : > { %3644 = vmatprep.subr.bf16.mxu1 %v3643_v12 }
 0x24a   : > { %3646 = vmatpush3.bf16.msra.mxu1 %v3643_v12 }
 0x24d   : > { %3396 = vmatmul.mubr.msk.f32.vlgmr.msra.gmra.mrb[4].mxu1 %vm550_vm0, %v765_v14 }
 0x24e   : > { %3398 = vmatprep.mubr.msk.f32.mxu1 %vm550_vm0, %v766_v15 }
 0x251   : > { %3399 = vmatmul.mubr.msk.f32.gmra.mrb[6].mxu1 %vm550_vm0, %v767_v16 }
 0x252   : > { %3401 = vmatprep.mubr.msk.f32.mxu1 %vm550_vm0, %v768_v17 }
 0x255   : > { %3402 = vmatmul.mubr.msk.f32.gmra.mrb[8].mxu1 %vm550_vm0, %v769_v18 }
 0x256   : > { %3404 = vmatprep.mubr.msk.f32.mxu1 %vm550_vm0, %v770_v19 }
 0x259   : > { %3405 = vmatmul.mubr.msk.f32.gmra.mrb[10].mxu1 %vm550_vm0, %v771_v20 }
 0x310   : > { %v3375_v21 = vpop.f32.mrb[0].mxu1 }
 0x311   : > { %761 = vst.msk [vmem:[#allocation2 + $0x8] sm:$0xff] %vm550_vm0, %v3375_v21  ;;  %v672_v22 = vpop.f32.mrb[1].mxu1 }
 0x312   : > { %760 = vst.msk [vmem:[#allocation2] sm:$0xff] %vm550_vm0, %v672_v22 }
 0x318   : > { %v3386_v23 = vpop.f32.mrb[2].mxu1  ;;  %v915_v24 = vld [vmem:[#allocation2 + $0x8] sm:$0xff] }
 0x319   : > { %763 = vst.msk [vmem:[#allocation3 + $0x8] sm:$0xff] %vm550_vm0, %v3386_v23  ;;  %v751_v25 = vpop.f32.mrb[3].mxu1  ;;  %v914_v26 = vld [vmem:[#allocation2] sm:$0xff] }
 0x31a   : > { %762 = vst.msk [vmem:[#allocation3] sm:$0xff] %vm550_vm0, %v751_v25  ;;  %v4140_v28 = vpack.i.bf16 %v915_v24, %v914_v26  ;;  %v3647_v29 = vpack.c.bf16 %v915_v24, %v914_v26 }
 0x31c   : > { %3739 = vrot.lane.b32.xlu0 %v4140_v28, %s3924_s12  ;;  %3649 = vmatprep.subr.msk.bf16.mxu1 %vm4135_vm2, %v3647_v29 }
 0x31d   : > { %3652 = vmatpush3.bf16.xpose.msk.msra.mxu1 %vm4135_vm2, %v3647_v29 }
 0x320   : > { %v3397_v30 = vpop.f32.mrb[4].mxu1  ;;  %v917_v31 = vld [vmem:[#allocation3 + $0x8] sm:$0xff] }
 0x321   : > { %v4148_v32 = vmul.f32 0.35355338, %v3397_v30  ;;  %v867_v33 = vpop.f32.mrb[5].mxu1  ;;  %v916_v34 = vld [vmem:[#allocation3] sm:$0xff] }
 0x322   : > { %v4150_v35 = vmul.f32 0.35355338, %v867_v33  ;;  %v3653_v36 = vpack.c.bf16 %v917_v31, %v916_v34  ;;  %v4152_v37 = vpack.i.bf16 %v917_v31, %v916_v34 }
 0x323   : > { %1278 = vrot.lane.b32.xlu1 %v4148_v32, %s3924_s12 }
 0x324   : > { %v3400_v38 = vpop.f32.mrb[6].mxu1  ;;  %3411 = vmatprep.mubr.msk.f32.mxu1 %vm922_vm1, %v4150_v35  ;;  %3654 = vmatprep.subr.bf16.mxu1 %v3653_v36 }
 0x325   : > { %v4158_v39 = vmul.f32 0.35355338, %v3400_v38  ;;  %v877_v40 = vpop.f32.mrb[7].mxu1  ;;  %3412 = vmatmul.mubr.msk.f32.vlgmr.msra.gmra.mrb[12].mxu1 %vm922_vm1, %v4148_v32 }
 0x326   : > { %v4162_v41 = vmul.f32 0.35355338, %v877_v40  ;;  %3656 = vmatpush3.bf16.msra.mxu1 %v3653_v36 }
 0x327   : > { %1276 = vrot.lane.b32.xlu1 %v4150_v35, %s3924_s12  ;;  %1282 = vrot.lane.b32.xlu0 %v4158_v39, %s3924_s12 }
 0x328   : > { %v3403_v42 = vpop.f32.mrb[8].mxu1  ;;  %3414 = vmatprep.mubr.msk.f32.mxu1 %vm922_vm1, %v4162_v41 }
 0x329   : > { %v4170_v43 = vmul.f32 0.35355338, %v3403_v42  ;;  %v887_v44 = vpop.f32.mrb[9].mxu1  ;;  %3415 = vmatmul.mubr.msk.f32.gmra.mrb[14].mxu1 %vm922_vm1, %v4158_v39 }
 0x32a   : > { %v4174_v45 = vmul.f32 0.35355338, %v887_v44 }
 0x32b   : > { %1280 = vrot.lane.b32.xlu1 %v4162_v41, %s3924_s12  ;;  %1286 = vrot.lane.b32.xlu0 %v4170_v43, %s3924_s12 }
 0x32c   : > { %v3406_v46 = vpop.f32.mrb[10].mxu1  ;;  %3417 = vmatprep.mubr.msk.f32.mxu1 %vm922_vm1, %v4174_v45 }
 0x32d   : > { %v4182_v47 = vmul.f32 0.35355338, %v3406_v46  ;;  %v897_v48 = vpop.f32.mrb[11].mxu1  ;;  %3418 = vmatmul.mubr.msk.f32.gmra.mrb[16].mxu1 %vm922_vm1, %v4170_v43 }
 0x32e   : > { %v4186_v49 = vmul.f32 0.35355338, %v897_v48 }
 0x32f   : > { %1284 = vrot.lane.b32.xlu1 %v4174_v45, %s3924_s12  ;;  %1290 = vrot.lane.b32.xlu0 %v4182_v47, %s3924_s12 }
 0x330   : > { %3420 = vmatprep.mubr.msk.f32.mxu1 %vm922_vm1, %v4186_v49 }
 0x331   : > { %3421 = vmatmul.mubr.msk.f32.gmra.mrb[18].mxu1 %vm922_vm1, %v4182_v47 }
 0x333   : > { %1288 = vrot.lane.b32.xlu1 %v4186_v49, %s3924_s12 }
 0x38e   : > { %v3740_v50 = vpop.permute.xlu0 %3739 }
 0x38f   : > { %v3742_v51 = vunpack.i.h.bf16 %v3740_v50  ;;  %v3741_v52 = vunpack.i.l.bf16 %v3740_v50 }
 0x391   : > { %v3657_v53 = vpack.c.bf16 %v3742_v51, %v3741_v52 }
 0x393   : > { %3659 = vmatprep.subr.msk.bf16.mxu0 %vm4135_vm2, %v3657_v53 }
 0x394   : > { %3662 = vmatpush3.bf16.xpose.msk.msra.mxu0 %vm4135_vm2, %v3657_v53 }
 0x395   : > { %v1279_v54 = vpop.permute.xlu1 %1278 }
 0x399   : > { %v1277_v55 = vpop.permute.xlu1 %1276  ;;  %v1283_v56 = vpop.permute.xlu0 %1282 }
 0x39a   : > { %3443 = vmatprep.mubr.msk.f32.mxu0 %vm922_vm1, %v1277_v55 }
 0x39b   : > { %3444 = vmatmul.mubr.msk.f32.vlgmr.msra.gmra.mrb[2].mxu0 %vm922_vm1, %v1279_v54 }
 0x39d   : > { %v1281_v57 = vpop.permute.xlu1 %1280  ;;  %v1287_v58 = vpop.permute.xlu0 %1286 }
 0x39e   : > { %3446 = vmatprep.mubr.msk.f32.mxu0 %vm922_vm1, %v1281_v57 }
 0x39f   : > { %3447 = vmatmul.mubr.msk.f32.gmra.mrb[4].mxu0 %vm922_vm1, %v1283_v56 }
 0x3a1   : > { %v1285_v59 = vpop.permute.xlu1 %1284  ;;  %v1291_v60 = vpop.permute.xlu0 %1290 }
 0x3a2   : > { %3449 = vmatprep.mubr.msk.f32.mxu0 %vm922_vm1, %v1285_v59 }
 0x3a3   : > { %3450 = vmatmul.mubr.msk.f32.gmra.mrb[6].mxu0 %vm922_vm1, %v1287_v58 }
 0x3a5   : > { %v1289_v61 = vpop.permute.xlu1 %1288 }
 0x3a6   : > { %3452 = vmatprep.mubr.msk.f32.mxu0 %vm922_vm1, %v1289_v61 }
 0x3a7   : > { %3453 = vmatmul.mubr.msk.f32.gmra.mrb[8].mxu0 %vm922_vm1, %v1291_v60 }
 0x3f8   : > { %v3413_v62 = vpop.f32.mrb[12].mxu1 }
 0x3f9   : > { %v4210_v63 = vpop.f32.mrb[13].mxu1  ;;  %v1062_v0 = vsel %vm1058_vm3, %v3413_v62, -inf }
 0x3fa   : > { %1063 = vmax.xlane.f32.xlu0 %v1062_v0  ;;  %v1059_v1 = vsel %vm1058_vm3, %v4210_v63, -inf }
 0x3fb   : > { %1060 = vmax.xlane.f32.xlu1 %v1059_v1 }
 0x3fc   : > { %v3416_v2 = vpop.f32.mrb[14].mxu1 }
 0x3fd   : > { %v4215_v3 = vpop.f32.mrb[15].mxu1  ;;  %v1068_v7 = vsel %vm1058_vm3, %v3416_v2, -inf }
 0x3fe   : > { %v1065_v4 = vsel %vm1058_vm3, %v4215_v3, -inf }
 0x3ff   : > { %1066 = vmax.xlane.f32.xlu0 %v1065_v4 }
 0x400   : > { %v3419_v5 = vpop.f32.mrb[16].mxu1 }
 0x401   : > { %v4219_v6 = vpop.f32.mrb[17].mxu1  ;;  %v1074_v11 = vsel %vm1058_vm3, %v3419_v5, -inf }
 0x402   : > { %v1071_v8 = vsel %vm1058_vm3, %v4219_v6, -inf }
 0x403   : > { %1069 = vmax.xlane.f32.xlu0 %v1068_v7  ;;  %1072 = vmax.xlane.f32.xlu1 %v1071_v8 }
 0x404   : > { %v3422_v9 = vpop.f32.mrb[18].mxu1 }
 0x405   : > { %v4224_v10 = vpop.f32.mrb[19].mxu1  ;;  %v1080_v13 = vsel %vm1058_vm3, %v3422_v9, -inf }
 0x406   : > { %v1077_v12 = vsel %vm1058_vm3, %v4224_v10, -inf }
 0x407   : > { %1075 = vmax.xlane.f32.xlu0 %v1074_v11  ;;  %1078 = vmax.xlane.f32.xlu1 %v1077_v12 }
 0x40b   : > { %1081 = vmax.xlane.f32.xlu0 %v1080_v13 }
 0x46e   : > { %v4230_v14 = vpop.f32.mrb[2].mxu0 }
 0x46f   : > { %v4232_v15 = vpop.f32.mrb[3].mxu0  ;;  %v1424_v16 = vsel %vm1058_vm3, %v4230_v14, -inf }
 0x470   : > { %1425 = vmax.xlane.f32.xlu0 %v1424_v16  ;;  %v1421_v17 = vsel %vm1058_vm3, %v4232_v15, -inf }
 0x471   : > { %1422 = vmax.xlane.f32.xlu1 %v1421_v17 }
 0x472   : > { %v4238_v18 = vpop.f32.mrb[4].mxu0 }
 0x473   : > { %v4240_v19 = vpop.f32.mrb[5].mxu0  ;;  %v1430_v20 = vsel %vm1058_vm3, %v4238_v18, -inf }
 0x474   : > { %1431 = vmax.xlane.f32.xlu0 %v1430_v20  ;;  %v1427_v21 = vsel %vm1058_vm3, %v4240_v19, -inf }
 0x475   : > { %1428 = vmax.xlane.f32.xlu1 %v1427_v21 }
 0x476   : > { %v4246_v22 = vpop.f32.mrb[6].mxu0 }
 0x477   : > { %v4248_v23 = vpop.f32.mrb[7].mxu0  ;;  %v1436_v24 = vsel %vm1058_vm3, %v4246_v22, -inf }
 0x478   : > { %1437 = vmax.xlane.f32.xlu0 %v1436_v24  ;;  %v1433_v25 = vsel %vm1058_vm3, %v4248_v23, -inf }
 0x479   : > { %1434 = vmax.xlane.f32.xlu1 %v1433_v25 }
 0x47a   : > { %v4254_v26 = vpop.f32.mrb[8].mxu0 }
 0x47b   : > { %v4256_v29 = vpop.f32.mrb[9].mxu0  ;;  %v1442_v30 = vsel %vm1058_vm3, %v4254_v26, -inf }
 0x47c   : > { %1443 = vmax.xlane.f32.xlu0 %v1442_v30  ;;  %v1439_v31 = vsel %vm1058_vm3, %v4256_v29, -inf }
 0x47d   : > { %1440 = vmax.xlane.f32.xlu1 %v1439_v31 }
 0x487   : > { %v1064_v33 = vpop.xlane.xlu0 %1063 }
 0x488   : > { %v1084_v34 = vsub.f32 %v3413_v62, %v1064_v33  ;;  %v1061_v54 = vpop.xlane.xlu1 %1060 }
 0x489   : > { %v1083_v57 = vsub.f32 %v4210_v63, %v1061_v54 }
 0x48a   : > { %v1093_v36 = vmul.f32 1.442695, %v1084_v34 }
 0x48b   : > { %v1091_v60 = vmul.f32 1.442695, %v1083_v57 }
 0x48c   : > { %3772 = vpow2.f32 %v1093_v36  ;;  %v1067_v38 = vpop.xlane.xlu0 %1066 }
 0x48d   : > { %v1085_v61 = vsub.f32 %v4215_v3, %v1067_v38 }
 0x48e   : > { %3744 = vrot.lane.b32.xlu1 %v4152_v37, %s3924_s12 }
 0x48f   : > { %v1095_v1 = vmul.f32 1.442695, %v1085_v61 }
 0x490   : > { %v1070_v40 = vpop.xlane.xlu0 %1069  ;;  %v1073_v59 = vpop.xlane.xlu1 %1072 }
 0x491   : > { %v1086_v42 = vsub.f32 %v3416_v2, %v1070_v40  ;;  %v1087_v2 = vsub.f32 %v4219_v6, %v1073_v59 }
 0x493   : > { %v1097_v44 = vmul.f32 1.442695, %v1086_v42  ;;  %v1099_v7 = vmul.f32 1.442695, %v1087_v2 }
 0x494   : > { %v1076_v46 = vpop.xlane.xlu0 %1075  ;;  %v1079_v4 = vpop.xlane.xlu1 %1078 }
 0x495   : > { %3774 = vpow2.f32 %v1097_v44  ;;  %v1088_v48 = vsub.f32 %v3419_v5, %v1076_v46  ;;  %v1089_v3 = vsub.f32 %v4224_v10, %v1079_v4 }
 0x496   : > { %v4264_v50 = vpop.eup %3772 }
 0x497   : > { %v1101_v51 = vmul.f32 1.442695, %v1088_v48  ;;  %v1110_v52 = vsel %vm1058_vm3, %v4264_v50, 0.0 }
 0x498   : > { %1111 = vadd.xlane.f32.xlu0 %v1110_v52  ;;  %v1082_v53 = vpop.xlane.xlu0 %1081 }
 0x499   : > { %3776 = vpow2.f32 %v1101_v51  ;;  %v1090_v55 = vsub.f32 %v3422_v9, %v1082_v53  ;;  %v1103_v9 = vmul.f32 1.442695, %v1089_v3 }
 0x49b   : > { %v1105_v56 = vmul.f32 1.442695, %v1090_v55 }
 0x49d   : > { %3778 = vpow2.f32 %v1105_v56 }
 0x49e   : > { %3780 = vpow2.f32 %v1091_v60 }
 0x49f   : > { %v4269_v58 = vpop.eup %3774  ;;  %3782 = vpow2.f32 %v1095_v1 }
 0x4a0   : > { %v1116_v62 = vsel %vm1058_vm3, %v4269_v58, 0.0  ;;  %3784 = vpow2.f32 %v1099_v7 }
 0x4a1   : > { %1117 = vadd.xlane.f32.xlu0 %v1116_v62  ;;  %3786 = vpow2.f32 %v1103_v9 }
 0x4a3   : > { %v4274_v0 = vpop.eup %3776 }
 0x4a4   : > { %v1122_v63 = vsel %vm1058_vm3, %v4274_v0, 0.0 }
 0x4a5   : > { %1123 = vadd.xlane.f32.xlu0 %v1122_v63 }
 0x4a7   : > { %v4279_v5 = vpop.eup %3778 }
 0x4a8   : > { %v1128_v8 = vsel %vm1058_vm3, %v4279_v5, 0.0  ;;  %v4284_v11 = vpop.eup %3780 }
 0x4a9   : > { %1129 = vadd.xlane.f32.xlu0 %v1128_v8  ;;  %v1107_v6 = vsel %vm1058_vm3, %v4284_v11, 0.0  ;;  %v4288_v12 = vpop.eup %3782 }
 0x4aa   : > { %v1113_v13 = vsel %vm1058_vm3, %v4288_v12, 0.0  ;;  %v4292_v16 = vpop.eup %3784 }
 0x4ab   : > { %v1119_v10 = vsel %vm1058_vm3, %v4292_v16, 0.0  ;;  %v4296_v17 = vpop.eup %3786 }
 0x4ac   : > { %v1125_v20 = vsel %vm1058_vm3, %v4296_v17, 0.0 }
 0x4b2   : > { %1108 = vadd.xlane.f32.xlu1 %v1107_v6 }
 0x4b6   : > { %1114 = vadd.xlane.f32.xlu1 %v1113_v13 }
 0x4ba   : > { %1120 = vadd.xlane.f32.xlu1 %v1119_v10 }
 0x4be   : > { %1126 = vadd.xlane.f32.xlu1 %v1125_v20 }
 0x4fd   : > { %v1426_v21 = vpop.xlane.xlu0 %1425 }
 0x4fe   : > { %v1446_v24 = vsub.f32 %v4230_v14, %v1426_v21  ;;  %v1423_v25 = vpop.xlane.xlu1 %1422 }
 0x4ff   : > { %v1445_v30 = vsub.f32 %v4232_v15, %v1423_v25 }
 0x500   : > { %v1455_v31 = vmul.f32 1.442695, %v1446_v24 }
 0x501   : > { %v1453_v33 = vmul.f32 1.442695, %v1445_v30  ;;  %v1432_v34 = vpop.xlane.xlu0 %1431 }
 0x502   : > { %3788 = vpow2.f32 %v1455_v31  ;;  %v1448_v36 = vsub.f32 %v4238_v18, %v1432_v34  ;;  %v1429_v38 = vpop.xlane.xlu1 %1428 }
 0x503   : > { %3790 = vpow2.f32 %v1453_v33  ;;  %v1447_v40 = vsub.f32 %v4240_v19, %v1429_v38 }
 0x504   : > { %v1459_v42 = vmul.f32 1.442695, %v1448_v36 }
 0x505   : > { %v1457_v44 = vmul.f32 1.442695, %v1447_v40  ;;  %v1438_v46 = vpop.xlane.xlu0 %1437 }
 0x506   : > { %3792 = vpow2.f32 %v1459_v42  ;;  %v1450_v48 = vsub.f32 %v4246_v22, %v1438_v46  ;;  %v1435_v14 = vpop.xlane.xlu1 %1434 }
 0x507   : > { %3794 = vpow2.f32 %v1457_v44  ;;  %v1449_v15 = vsub.f32 %v4248_v23, %v1435_v14 }
 0x508   : > { %v1463_v51 = vmul.f32 1.442695, %v1450_v48 }
 0x509   : > { %v1461_v52 = vmul.f32 1.442695, %v1449_v15  ;;  %v1444_v53 = vpop.xlane.xlu0 %1443 }
 0x50a   : > { %3796 = vpow2.f32 %v1463_v51  ;;  %v1452_v18 = vsub.f32 %v4254_v26, %v1444_v53  ;;  %v1441_v54 = vpop.xlane.xlu1 %1440 }
 0x50b   : > { %3798 = vpow2.f32 %v1461_v52  ;;  %v1451_v13 = vsub.f32 %v4256_v29, %v1441_v54 }
 0x50c   : > { %v4307_v55 = vpop.eup %3788  ;;  %v1467_v19 = vmul.f32 1.442695, %v1452_v18 }
 0x50d   : > { %v4309_v56 = vpop.eup %3790  ;;  %v1472_v22 = vsel %vm1058_vm3, %v4307_v55, 0.0  ;;  %v1465_v20 = vmul.f32 1.442695, %v1451_v13 }
 0x50e   : > { %3800 = vpow2.f32 %v1467_v19  ;;  %1473 = vadd.xlane.f32.xlu0 %v1472_v22  ;;  %v3745_v57 = vpop.permute.xlu1 %3744  ;;  %v1469_v23 = vsel %vm1058_vm3, %v4309_v56, 0.0 }
 0x50f   : > { %v3747_v59 = vunpack.i.h.bf16 %v3745_v57  ;;  %v3746_v60 = vunpack.i.l.bf16 %v3745_v57  ;;  %1470 = vadd.xlane.f32.xlu1 %v1469_v23 }
 0x510   : > { %v4315_v26 = vpop.eup %3792 }
 0x511   : > { %v4317_v61 = vpop.eup %3794  ;;  %v3663_v62 = vpack.c.bf16 %v3747_v59, %v3746_v60  ;;  %v1478_v1 = vsel %vm1058_vm3, %v4315_v26, 0.0 }
 0x512   : > { %1479 = vadd.xlane.f32.xlu0 %v1478_v1  ;;  %v1475_v2 = vsel %vm1058_vm3, %v4317_v61, 0.0 }
 0x513   : > { %1476 = vadd.xlane.f32.xlu1 %v1475_v2  ;;  %3664 = vmatprep.subr.bf16.mxu1 %v3663_v62 }
 0x514   : > { %v4323_v63 = vpop.eup %3796 }
 0x515   : > { %v4325_v4 = vpop.eup %3798  ;;  %v1484_v7 = vsel %vm1058_vm3, %v4323_v63, 0.0 }
 0x516   : > { %1485 = vadd.xlane.f32.xlu0 %v1484_v7  ;;  %v1481_v3 = vsel %vm1058_vm3, %v4325_v4, 0.0 }
 0x517   : > { %1482 = vadd.xlane.f32.xlu1 %v1481_v3 }
 0x518   : > { %v4331_v8 = vpop.eup %3800 }
 0x519   : > { %v1490_v9 = vsel %vm1058_vm3, %v4331_v8, 0.0 }
 0x51a   : > { %1491 = vadd.xlane.f32.xlu0 %v1490_v9 }
 0x525   : > { %v1112_v6 = vpop.xlane.xlu0 %1111 }
 0x526   : > { %3802 = vrcp.f32 %v1112_v6 }
 0x528   : > { %1904 = vrot.lane.b32.xlu1 %v4150_v35, %s3925_s13 }
 0x52c   : > { %1906 = vrot.lane.b32.xlu1 %v4148_v32, %s3925_s13 }
 0x52e   : > { %v1118_v10 = vpop.xlane.xlu0 %1117 }
 0x530   : > { %3749 = vrot.lane.b32.xlu0 %v4140_v28, %s3925_s13  ;;  %v3803_v33 = vpop.eup %3802 }
 0x531   : > { %v1140_v40 = vmul.f32 %v3803_v33, %v4264_v50 }
 0x532   : > { %v1124_v24 = vpop.xlane.xlu0 %1123 }
 0x534   : > { %1910 = vrot.lane.b32.xlu0 %v4158_v39, %s3925_s13 }
 0x536   : > { %v1130_v31 = vpop.xlane.xlu0 %1129 }
 0x538   : > { %1914 = vrot.lane.b32.xlu0 %v4170_v43, %s3925_s13 }
 0x53c   : > { %1918 = vrot.lane.b32.xlu0 %v4182_v47, %s3925_s13 }
 0x53f   : > { %v1109_v21 = vpop.xlane.xlu1 %1108 }
 0x540   : > { %3804 = vrcp.f32 %v1109_v21 }
 0x541   : > { %3806 = vpow2.f32 %v1465_v20 }
 0x542   : > { %3808 = vrcp.f32 %v1118_v10 }
 0x543   : > { %v1115_v25 = vpop.xlane.xlu1 %1114 }
 0x544   : > { %3810 = vrcp.f32 %v1115_v25 }
 0x545   : > { %3812 = vrcp.f32 %v1124_v24 }
 0x547   : > { %v1121_v30 = vpop.xlane.xlu1 %1120 }
 0x548   : > { %3814 = vrcp.f32 %v1121_v30 }
 0x549   : > { %3816 = vrcp.f32 %v1130_v31 }
 0x54a   : > { %v3805_v34 = vpop.eup %3804 }
 0x54b   : > { %v1127_v29 = vpop.xlane.xlu1 %1126  ;;  %v1139_v36 = vmul.f32 %v3805_v34, %v4284_v11  ;;  %v4349_v38 = vpop.eup %3806 }
 0x54c   : > { %3818 = vrcp.f32 %v1127_v29  ;;  %v3809_v42 = vpop.eup %3808  ;;  %v1487_v46 = vsel %vm1058_vm3, %v4349_v38, 0.0  ;;  %v919_v29 = vld [vmem:[%s4574_s9 + $0x8] sm:$0xff] }
 0x54d   : > { %3427 = vmatprep.mubr.msk.f32.mxu1 %vm1058_vm3, %v1139_v36  ;;  %v1142_v11 = vmul.f32 %v3809_v42, %v4269_v58  ;;  %3471 = vmatprep.subr.mxu0 %v919_v29 }
 0x54e   : > { %v3811_v44 = vpop.eup %3810  ;;  %3428 = vmatmul.mubr.msk.f32.vlgmr.msra.gmra.mrb[20].mxu1 %vm1058_vm3, %v1140_v40  ;;  %3472 = vmatpush3.msra.mxu0 %v919_v29 }
 0x54f   : > { %3666 = vmatpush3.bf16.msra.mxu1 %v3663_v62  ;;  %v1141_v48 = vmul.f32 %v3811_v44, %v4288_v12  ;;  %v3813_v14 = vpop.eup %3812 }
 0x550   : > { %1488 = vadd.xlane.f32.xlu1 %v1487_v46  ;;  %v1144_v51 = vmul.f32 %v3813_v14, %v4274_v0  ;;  %v918_v14 = vld [vmem:[%s4574_s9] sm:$0xff] }
 0x551   : > { %3430 = vmatprep.mubr.msk.f32.mxu1 %vm1058_vm3, %v1141_v48  ;;  %3485 = vmatprep.subr.mxu0 %v918_v14 }
 0x552   : > { %v3815_v50 = vpop.eup %3814  ;;  %3431 = vmatmul.mubr.msk.f32.gmra.mrb[22].mxu1 %vm1058_vm3, %v1142_v11 }
 0x553   : > { %v1143_v15 = vmul.f32 %v3815_v50, %v4292_v16  ;;  %v3817_v52 = vpop.eup %3816 }
 0x554   : > { %v1146_v58 = vmul.f32 %v3817_v52, %v4279_v5 }
 0x555   : > { %3433 = vmatprep.mubr.msk.f32.mxu1 %vm1058_vm3, %v1143_v15 }
 0x556   : > { %v3819_v53 = vpop.eup %3818  ;;  %3434 = vmatmul.mubr.msk.f32.gmra.mrb[24].mxu1 %vm1058_vm3, %v1144_v51 }
 0x557   : > { %v1145_v12 = vmul.f32 %v3819_v53, %v4296_v17 }
 0x559   : > { %3436 = vmatprep.mubr.msk.f32.mxu1 %vm1058_vm3, %v1145_v12 }
 0x55a   : > { %3437 = vmatmul.mubr.msk.f32.gmra.mrb[26].mxu1 %vm1058_vm3, %v1146_v58 }
 0x561   : > { %1908 = vrot.lane.b32.xlu1 %v4162_v41, %s3925_s13 }
 0x565   : > { %1912 = vrot.lane.b32.xlu1 %v4174_v45, %s3925_s13 }
 0x569   : > { %1916 = vrot.lane.b32.xlu1 %v4186_v49, %s3925_s13 }
 0x59b   : > { %v1474_v0 = vpop.xlane.xlu0 %1473 }
 0x59c   : > { %3820 = vrcp.f32 %v1474_v0  ;;  %v1471_v16 = vpop.xlane.xlu1 %1470 }
 0x59d   : > { %3822 = vrcp.f32 %v1471_v16 }
 0x59f   : > { %v1480_v17 = vpop.xlane.xlu0 %1479 }
 0x5a0   : > { %3824 = vrcp.f32 %v1480_v17  ;;  %v1477_v5 = vpop.xlane.xlu1 %1476 }
 0x5a1   : > { %3826 = vrcp.f32 %v1477_v5 }
 0x5a3   : > { %v1486_v18 = vpop.xlane.xlu0 %1485 }
 0x5a4   : > { %3828 = vrcp.f32 %v1486_v18  ;;  %v1483_v54 = vpop.xlane.xlu1 %1482 }
 0x5a5   : > { %3830 = vrcp.f32 %v1483_v54 }
 0x5a6   : > { %v3821_v19 = vpop.eup %3820 }
 0x5a7   : > { %v3823_v22 = vpop.eup %3822  ;;  %v1492_v57 = vpop.xlane.xlu0 %1491  ;;  %v1502_v59 = vmul.f32 %v3821_v19, %v4307_v55 }
 0x5a8   : > { %v1501_v23 = vmul.f32 %v3823_v22, %v4309_v56  ;;  %3832 = vrcp.f32 %v1492_v57 }
 0x5aa   : > { %v3825_v60 = vpop.eup %3824  ;;  %3459 = vmatprep.mubr.msk.f32.mxu1 %vm1058_vm3, %v1501_v23 }
 0x5ab   : > { %v3827_v62 = vpop.eup %3826  ;;  %v3750_v1 = vpop.permute.xlu0 %3749  ;;  %3460 = vmatmul.mubr.msk.f32.vlgmr.msra.gmra.mrb[28].mxu1 %vm1058_vm3, %v1502_v59  ;;  %v1504_v9 = vmul.f32 %v3825_v60, %v4315_v26 }
 0x5ac   : > { %v3752_v2 = vunpack.i.h.bf16 %v3750_v1  ;;  %v3751_v7 = vunpack.i.l.bf16 %v3750_v1  ;;  %v1503_v3 = vmul.f32 %v3827_v62, %v4317_v61  ;;  %v1905_v26 = vpop.permute.xlu1 %1904 }
 0x5ae   : > { %v3829_v6 = vpop.eup %3828  ;;  %v3667_v13 = vpack.c.bf16 %v3752_v2, %v3751_v7  ;;  %3462 = vmatprep.mubr.msk.f32.mxu1 %vm1058_vm3, %v1503_v3 }
 0x5af   : > { %v3831_v56 = vpop.eup %3830  ;;  %3463 = vmatmul.mubr.msk.f32.gmra.mrb[30].mxu1 %vm1058_vm3, %v1504_v9  ;;  %v1506_v10 = vmul.f32 %v3829_v6, %v4323_v63  ;;  %v1911_v63 = vpop.permute.xlu0 %1910 }
 0x5b0   : > { %3669 = vmatprep.subr.msk.bf16.mxu1 %vm4135_vm2, %v3667_v13  ;;  %v1505_v55 = vmul.f32 %v3831_v56, %v4325_v4  ;;  %v1907_v61 = vpop.permute.xlu1 %1906 }
 0x5b1   : > { %3672 = vmatpush3.bf16.xpose.msk.msra.mxu1 %vm4135_vm2, %v3667_v13 }
 0x5b2   : > { %3465 = vmatprep.mubr.msk.f32.mxu1 %vm1058_vm3, %v1505_v55  ;;  %v3833_v21 = vpop.eup %3832 }
 0x5b3   : > { %3466 = vmatmul.mubr.msk.f32.gmra.mrb[32].mxu1 %vm1058_vm3, %v1506_v10  ;;  %v1508_v4 = vmul.f32 %v3833_v21, %v4331_v8  ;;  %v1915_v33 = vpop.permute.xlu0 %1914 }
 0x5b7   : > { %v1919_v8 = vpop.permute.xlu0 %1918 }
 0x5dd   : > { %v1489_v20 = vpop.xlane.xlu1 %1488 }
 0x5de   : > { %3834 = vrcp.f32 %v1489_v20 }
 0x5e1   : > { %v1909_v30 = vpop.permute.xlu1 %1908 }
 0x5e5   : > { %v1913_v31 = vpop.permute.xlu1 %1912 }
 0x5e8   : > { %v3835_v24 = vpop.eup %3834 }
 0x5e9   : > { %v1507_v25 = vmul.f32 %v3835_v24, %v4349_v38  ;;  %v1917_v34 = vpop.permute.xlu1 %1916 }
 0x5eb   : > { %3468 = vmatprep.mubr.msk.f32.mxu1 %vm1058_vm3, %v1507_v25 }
 0x5ec   : > { %3469 = vmatmul.mubr.msk.f32.gmra.mrb[34].mxu1 %vm1058_vm3, %v1508_v4 }
 0x5ed   : > { %3503 = vmatprep.mubr.msk.f32.mxu1 %vm922_vm1, %v1905_v26 }
 0x5f0   : > { %3504 = vmatmul.mubr.msk.f32.vlgmr.msra.gmra.mrb[36].mxu1 %vm922_vm1, %v1907_v61 }
 0x5f1   : > { %3506 = vmatprep.mubr.msk.f32.mxu1 %vm922_vm1, %v1909_v30 }
 0x5f4   : > { %3507 = vmatmul.mubr.msk.f32.gmra.mrb[38].mxu1 %vm922_vm1, %v1911_v63 }
 0x5f5   : > { %3509 = vmatprep.mubr.msk.f32.mxu1 %vm922_vm1, %v1913_v31 }
 0x5f8   : > { %3510 = vmatmul.mubr.msk.f32.gmra.mrb[40].mxu1 %vm922_vm1, %v1915_v33 }
 0x5f9   : > { %3512 = vmatprep.mubr.msk.f32.mxu1 %vm922_vm1, %v1917_v34 }
 0x5fc   : > { %3513 = vmatmul.mubr.msk.f32.gmra.mrb[42].mxu1 %vm922_vm1, %v1919_v8 }
 0x621   : > { %v3429_v36 = vpop.f32.mrb[20].mxu1 }
 0x622   : > { %v1237_v38 = vpop.f32.mrb[21].mxu1 }
 0x625   : > { %v3432_v40 = vpop.f32.mrb[22].mxu1 }
 0x626   : > { %v1247_v42 = vpop.f32.mrb[23].mxu1 }
 0x629   : > { %v3435_v44 = vpop.f32.mrb[24].mxu1 }
 0x62a   : > { %v1257_v46 = vpop.f32.mrb[25].mxu1 }
 0x62d   : > { %v3438_v48 = vpop.f32.mrb[26].mxu1 }
 0x62e   : > { %v1267_v11 = vpop.f32.mrb[27].mxu1 }
 0x67e   : > { %v3461_v50 = vpop.f32.mrb[28].mxu1 }
 0x67f   : > { %v1607_v15 = vpop.f32.mrb[29].mxu1 }
 0x680   : > { %3473 = vmatprep.mubr.msk.f32.mxu0 %vm922_vm1, %v1607_v15 }
 0x681   : > { %3474 = vmatmul.mubr.msk.f32.vlgmr.msra.gmra.mrb[10].mxu0 %vm922_vm1, %v3461_v50 }
 0x682   : > { %v3464_v51 = vpop.f32.mrb[30].mxu1  ;;  %3486 = vmatpush3.msra.mxu0 %v918_v14 }
 0x683   : > { %v1617_v52 = vpop.f32.mrb[31].mxu1 }
 0x684   : > { %3476 = vmatprep.mubr.msk.f32.mxu0 %vm922_vm1, %v1617_v52 }
 0x685   : > { %3477 = vmatmul.mubr.msk.f32.gmra.mrb[12].mxu0 %vm922_vm1, %v3464_v51 }
 0x686   : > { %v3467_v53 = vpop.f32.mrb[32].mxu1 }
 0x687   : > { %v1627_v12 = vpop.f32.mrb[33].mxu1 }
 0x688   : > { %3479 = vmatprep.mubr.msk.f32.mxu0 %vm922_vm1, %v1627_v12 }
 0x689   : > { %3480 = vmatmul.mubr.msk.f32.gmra.mrb[14].mxu0 %vm922_vm1, %v3467_v53 }
 0x6bf   : > { %v3470_v58 = vpop.f32.mrb[34].mxu1 }
 0x6c0   : > { %v1637_v0 = vpop.f32.mrb[35].mxu1 }
 0x6c1   : > { %3482 = vmatprep.mubr.msk.f32.mxu0 %vm922_vm1, %v1637_v0 }
 0x6c2   : > { %3483 = vmatmul.mubr.msk.f32.gmra.mrb[16].mxu0 %vm922_vm1, %v3470_v58 }
 0x6c3   : > { %3487 = vmatprep.mubr.msk.f32.mxu0 %vm922_vm1, %v1237_v38  ;;  %v3505_v16 = vpop.f32.mrb[36].mxu1 }
 0x6c4   : > { %v2010_v17 = vpop.f32.mrb[37].mxu1  ;;  %v2052_v5 = vsel %vm1058_vm3, %v3505_v16, -inf }
 0x6c5   : > { %2053 = vmax.xlane.f32.xlu0 %v2052_v5  ;;  %v2049_v18 = vsel %vm1058_vm3, %v2010_v17, -inf }
 0x6c6   : > { %2050 = vmax.xlane.f32.xlu1 %v2049_v18  ;;  %3488 = vmatmul.mubr.msk.f32.vlgmr.msra.gmra.mrb[10].mxu0 %vm922_vm1, %v3429_v36 }
 0x6c7   : > { %3490 = vmatprep.mubr.msk.f32.mxu0 %vm922_vm1, %v1247_v42  ;;  %v3508_v54 = vpop.f32.mrb[38].mxu1 }
 0x6c8   : > { %v2020_v19 = vpop.f32.mrb[39].mxu1  ;;  %v2058_v59 = vsel %vm1058_vm3, %v3508_v54, -inf }
 0x6c9   : > { %v2055_v22 = vsel %vm1058_vm3, %v2020_v19, -inf }
 0x6ca   : > { %2056 = vmax.xlane.f32.xlu0 %v2055_v22  ;;  %3491 = vmatmul.mubr.msk.f32.gmra.mrb[12].mxu0 %vm922_vm1, %v3432_v40 }
 0x6cb   : > { %3493 = vmatprep.mubr.msk.f32.mxu0 %vm922_vm1, %v1257_v46  ;;  %v3511_v57 = vpop.f32.mrb[40].mxu1 }
 0x6cc   : > { %v2030_v23 = vpop.f32.mrb[41].mxu1  ;;  %v2064_v2 = vsel %vm1058_vm3, %v3511_v57, -inf }
 0x6cd   : > { %v2061_v60 = vsel %vm1058_vm3, %v2030_v23, -inf }
 0x6ce   : > { %2059 = vmax.xlane.f32.xlu0 %v2058_v59  ;;  %2062 = vmax.xlane.f32.xlu1 %v2061_v60 }
 0x6cf   : > { %3494 = vmatmul.mubr.msk.f32.gmra.mrb[14].mxu0 %vm922_vm1, %v3435_v44  ;;  %v3514_v62 = vpop.f32.mrb[42].mxu1 }
 0x6d0   : > { %3496 = vmatprep.mubr.msk.f32.mxu0 %vm922_vm1, %v1267_v11  ;;  %v4428_v1 = vpop.f32.mrb[43].mxu1  ;;  %v2070_v3 = vsel %vm1058_vm3, %v3514_v62, -inf }
 0x6d1   : > { %v2067_v7 = vsel %vm1058_vm3, %v4428_v1, -inf }
 0x6d2   : > { %2065 = vmax.xlane.f32.xlu0 %v2064_v2  ;;  %2068 = vmax.xlane.f32.xlu1 %v2067_v7 }
 0x6d3   : > { %3497 = vmatmul.mubr.msk.f32.gmra.mrb[16].mxu0 %vm922_vm1, %v3438_v48 }
 0x6d6   : > { %2071 = vmax.xlane.f32.xlu0 %v2070_v3 }
 0x6e3   : > { %3754 = vrot.lane.b32.xlu1 %v4152_v37, %s3925_s13  ;;  %s444_s13 = scalar_lea.vmem %s4576_s11, %s3169_s24 }
 0x752   : > { %v2054_v9 = vpop.xlane.xlu0 %2053 }
 0x753   : > { %v2074_v6 = vsub.f32 %v3505_v16, %v2054_v9  ;;  %v2051_v13 = vpop.xlane.xlu1 %2050 }
 0x754   : > { %v2073_v56 = vsub.f32 %v2010_v17, %v2051_v13 }
 0x755   : > { %v2083_v55 = vmul.f32 1.442695, %v2074_v6 }
 0x756   : > { %v2081_v10 = vmul.f32 1.442695, %v2073_v56 }
 0x757   : > { %3836 = vpow2.f32 %v2083_v55  ;;  %v2057_v26 = vpop.xlane.xlu0 %2056 }
 0x758   : > { %3838 = vpow2.f32 %v2081_v10  ;;  %v2075_v61 = vsub.f32 %v2020_v19, %v2057_v26 }
 0x75a   : > { %v2085_v20 = vmul.f32 1.442695, %v2075_v61 }
 0x75b   : > { %v2060_v21 = vpop.xlane.xlu0 %2059  ;;  %v2063_v24 = vpop.xlane.xlu1 %2062 }
 0x75c   : > { %3840 = vpow2.f32 %v2085_v20  ;;  %v2076_v25 = vsub.f32 %v3508_v54, %v2060_v21  ;;  %v2077_v4 = vsub.f32 %v2030_v23, %v2063_v24 }
 0x75e   : > { %v2087_v30 = vmul.f32 1.442695, %v2076_v25  ;;  %v2089_v63 = vmul.f32 1.442695, %v2077_v4 }
 0x75f   : > { %v2066_v31 = vpop.xlane.xlu0 %2065  ;;  %v2069_v33 = vpop.xlane.xlu1 %2068 }
 0x760   : > { %3842 = vpow2.f32 %v2087_v30  ;;  %v2078_v34 = vsub.f32 %v3511_v57, %v2066_v31  ;;  %v2079_v18 = vsub.f32 %v4428_v1, %v2069_v33 }
 0x761   : > { %v4437_v8 = vpop.eup %3836  ;;  %3844 = vpow2.f32 %v2089_v63 }
 0x762   : > { %v3839_v29 = vpop.eup %3838  ;;  %v2091_v36 = vmul.f32 1.442695, %v2078_v34  ;;  %v2100_v38 = vsel %vm1058_vm3, %v4437_v8, 0.0  ;;  %v2093_v54 = vmul.f32 1.442695, %v2079_v18  ;;  %v920_v34 = vld [vmem:[%s4574_s9 + $0x10] sm:$0xff] }
 0x763   : > { %2101 = vadd.xlane.f32.xlu0 %v2100_v38  ;;  %v2072_v40 = vpop.xlane.xlu0 %2071  ;;  %v3755_v42 = vpop.permute.xlu1 %3754  ;;  %v2097_v44 = vsel %vm1058_vm3, %v3839_v29, 0.0  ;;  %3531 = vmatprep.subr.mxu0 %v920_v34 }
 0x764   : > { %3846 = vpow2.f32 %v2091_v36  ;;  %v2080_v46 = vsub.f32 %v3514_v62, %v2072_v40  ;;  %v3757_v48 = vunpack.i.h.bf16 %v3755_v42  ;;  %v3756_v11 = vunpack.i.l.bf16 %v3755_v42  ;;  %2098 = vadd.xlane.f32.xlu1 %v2097_v44  ;;  %3532 = vmatpush3.msra.mxu0 %v920_v34 }
 0x766   : > { %v3841_v14 = vpop.eup %3840  ;;  %v2095_v50 = vmul.f32 1.442695, %v2080_v46  ;;  %v3673_v15 = vpack.c.bf16 %v3757_v48, %v3756_v11 }
 0x767   : > { %v2103_v51 = vsel %vm1058_vm3, %v3841_v14, 0.0 }
 0x768   : > { %3848 = vpow2.f32 %v2095_v50  ;;  %2104 = vadd.xlane.f32.xlu1 %v2103_v51  ;;  %3674 = vmatprep.subr.bf16.mxu1 %v3673_v15 }
 0x769   : > { %3676 = vmatpush3.bf16.msra.mxu1 %v3673_v15  ;;  %3850 = vpow2.f32 %v2093_v54 }
 0x76a   : > { %v3843_v52 = vpop.eup %3842 }
 0x76b   : > { %v3845_v53 = vpop.eup %3844  ;;  %v2106_v12 = vsel %vm1058_vm3, %v3843_v52, 0.0 }
 0x76c   : > { %2107 = vadd.xlane.f32.xlu0 %v2106_v12  ;;  %v2109_v58 = vsel %vm1058_vm3, %v3845_v53, 0.0 }
 0x76d   : > { %2110 = vadd.xlane.f32.xlu1 %v2109_v58 }
 0x76e   : > { %v3847_v0 = vpop.eup %3846 }
 0x76f   : > { %v2112_v16 = vsel %vm1058_vm3, %v3847_v0, 0.0 }
 0x770   : > { %2113 = vadd.xlane.f32.xlu0 %v2112_v16 }
 0x772   : > { %v4446_v17 = vpop.eup %3848 }
 0x773   : > { %v2118_v5 = vsel %vm1058_vm3, %v4446_v17, 0.0 }
 0x774   : > { %2119 = vadd.xlane.f32.xlu0 %v2118_v5 }
 0x77e   : > { %2409 = vrot.lane.b32.xlu1 %v4150_v35, %s3926_s23  ;;  %v3851_v35 = vpop.eup %3850 }
 0x77f   : > { %v2115_v19 = vsel %vm1058_vm3, %v3851_v35, 0.0 }
 0x782   : > { %2411 = vrot.lane.b32.xlu1 %v4148_v32, %s3926_s23 }
 0x78a   : > { %3759 = vrot.lane.b32.xlu0 %v4140_v28, %s3926_s23 }
 0x78e   : > { %2415 = vrot.lane.b32.xlu0 %v4158_v39, %s3926_s23 }
 0x792   : > { %2419 = vrot.lane.b32.xlu0 %v4170_v43, %s3926_s23 }
 0x796   : > { %2423 = vrot.lane.b32.xlu0 %v4182_v47, %s3926_s23 }
 0x7a6   : > { %2116 = vadd.xlane.f32.xlu1 %v2115_v19 }
 0x7b7   : > { %2413 = vrot.lane.b32.xlu1 %v4162_v41, %s3926_s23 }
 0x7bb   : > { %2417 = vrot.lane.b32.xlu1 %v4174_v45, %s3926_s23 }
 0x7bf   : > { %2421 = vrot.lane.b32.xlu1 %v4186_v49, %s3926_s23 }
 0x7f0   : > { %v2102_v28 = vpop.xlane.xlu0 %2101 }
 0x7f1   : > { %3852 = vrcp.f32 %v2102_v28  ;;  %v2099_v32 = vpop.xlane.xlu1 %2098 }
 0x7f2   : > { %3854 = vrcp.f32 %v2099_v32 }
 0x7f5   : > { %v2105_v39 = vpop.xlane.xlu1 %2104 }
 0x7f6   : > { %3856 = vrcp.f32 %v2105_v39 }
 0x7f9   : > { %v2108_v43 = vpop.xlane.xlu0 %2107 }
 0x7fa   : > { %3858 = vrcp.f32 %v2108_v43  ;;  %v2111_v47 = vpop.xlane.xlu1 %2110 }
 0x7fb   : > { %v3853_v22 = vpop.eup %3852  ;;  %3860 = vrcp.f32 %v2111_v47 }
 0x7fc   : > { %v3855_v57 = vpop.eup %3854  ;;  %v2130_v59 = vmul.f32 %v3853_v22, %v4437_v8 }
 0x7fd   : > { %v2114_v23 = vpop.xlane.xlu0 %2113  ;;  %v2129_v41 = vmul.f32 %v3855_v57, %v3839_v29 }
 0x7fe   : > { %3862 = vrcp.f32 %v2114_v23  ;;  %v2410_v10 = vpop.permute.xlu1 %2409 }
 0x7ff   : > { %3519 = vmatprep.mubr.msk.f32.mxu1 %vm1058_vm3, %v2129_v41 }
 0x800   : > { %v3857_v45 = vpop.eup %3856  ;;  %3520 = vmatmul.mubr.msk.f32.vlgmr.msra.gmra.mrb[44].mxu1 %vm1058_vm3, %v2130_v59 }
 0x801   : > { %v2120_v49 = vpop.xlane.xlu0 %2119  ;;  %v2131_v60 = vmul.f32 %v3857_v45, %v3841_v14 }
 0x802   : > { %v2412_v26 = vpop.permute.xlu1 %2411  ;;  %3864 = vrcp.f32 %v2120_v49 }
 0x803   : > { %3522 = vmatprep.mubr.msk.f32.mxu1 %vm1058_vm3, %v2131_v60 }
 0x804   : > { %v3859_v62 = vpop.eup %3858 }
 0x805   : > { %v3861_v1 = vpop.eup %3860  ;;  %v3760_v2 = vpop.permute.xlu0 %3759  ;;  %v2132_v7 = vmul.f32 %v3859_v62, %v3843_v52 }
 0x806   : > { %v3762_v3 = vunpack.i.h.bf16 %v3760_v2  ;;  %v3761_v9 = vunpack.i.l.bf16 %v3760_v2  ;;  %v2133_v6 = vmul.f32 %v3861_v1, %v3845_v53 }
 0x807   : > { %3523 = vmatmul.mubr.msk.f32.gmra.mrb[46].mxu1 %vm1058_vm3, %v2132_v7 }
 0x808   : > { %v3863_v13 = vpop.eup %3862  ;;  %v3677_v56 = vpack.c.bf16 %v3762_v3, %v3761_v9  ;;  %3525 = vmatprep.mubr.msk.f32.mxu1 %vm1058_vm3, %v2133_v6 }
 0x809   : > { %v2134_v55 = vmul.f32 %v3863_v13, %v3847_v0  ;;  %v2416_v30 = vpop.permute.xlu0 %2415 }
 0x80a   : > { %3679 = vmatprep.subr.msk.bf16.mxu1 %vm4135_vm2, %v3677_v56 }
 0x80b   : > { %3526 = vmatmul.mubr.msk.f32.gmra.mrb[48].mxu1 %vm1058_vm3, %v2134_v55 }
 0x80c   : > { %3682 = vmatpush3.bf16.xpose.msk.msra.mxu1 %vm4135_vm2, %v3677_v56  ;;  %v3865_v20 = vpop.eup %3864 }
 0x80d   : > { %v2136_v25 = vmul.f32 %v3865_v20, %v4446_v17  ;;  %v2420_v63 = vpop.permute.xlu0 %2419 }
 0x811   : > { %v2424_v33 = vpop.permute.xlu0 %2423 }
 0x833   : > { %v2117_v61 = vpop.xlane.xlu1 %2116 }
 0x834   : > { %3866 = vrcp.f32 %v2117_v61 }
 0x837   : > { %v2414_v4 = vpop.permute.xlu1 %2413 }
 0x83b   : > { %v2418_v27 = vpop.permute.xlu1 %2417 }
 0x83e   : > { %v3867_v21 = vpop.eup %3866 }
 0x83f   : > { %v2135_v24 = vmul.f32 %v3867_v21, %v3851_v35  ;;  %v2422_v31 = vpop.permute.xlu1 %2421 }
 0x841   : > { %3528 = vmatprep.mubr.msk.f32.mxu1 %vm1058_vm3, %v2135_v24 }
 0x842   : > { %3529 = vmatmul.mubr.msk.f32.gmra.mrb[50].mxu1 %vm1058_vm3, %v2136_v25 }
 0x843   : > { %3549 = vmatprep.mubr.msk.f32.mxu1 %vm922_vm1, %v2410_v10 }
 0x846   : > { %3550 = vmatmul.mubr.msk.f32.vlgmr.msra.gmra.mrb[52].mxu1 %vm922_vm1, %v2412_v26 }
 0x847   : > { %3552 = vmatprep.mubr.msk.f32.mxu1 %vm922_vm1, %v2414_v4 }
 0x84a   : > { %3553 = vmatmul.mubr.msk.f32.gmra.mrb[54].mxu1 %vm922_vm1, %v2416_v30 }
 0x84b   : > { %3555 = vmatprep.mubr.msk.f32.mxu1 %vm922_vm1, %v2418_v27 }
 0x84e   : > { %3556 = vmatmul.mubr.msk.f32.gmra.mrb[56].mxu1 %vm922_vm1, %v2420_v63 }
 0x84f   : > { %3558 = vmatprep.mubr.msk.f32.mxu1 %vm922_vm1, %v2422_v31 }
 0x852   : > { %3559 = vmatmul.mubr.msk.f32.gmra.mrb[58].mxu1 %vm922_vm1, %v2424_v33 }
 0x8d3   : > { %v3521_v8 = vpop.f32.mrb[44].mxu1 }
 0x8d4   : > { %v2233_v29 = vpop.f32.mrb[45].mxu1 }
 0x8d5   : > { %3533 = vmatprep.mubr.msk.f32.mxu0 %vm922_vm1, %v2233_v29 }
 0x8d6   : > { %3534 = vmatmul.mubr.msk.f32.vlgmr.msra.gmra.mrb[10].mxu0 %vm922_vm1, %v3521_v8 }
 0x8da   : > { %v3524_v36 = vpop.f32.mrb[46].mxu1 }
 0x8db   : > { %v2243_v38 = vpop.f32.mrb[47].mxu1 }
 0x8dc   : > { %3536 = vmatprep.mubr.msk.f32.mxu0 %vm922_vm1, %v2243_v38 }
 0x8dd   : > { %3537 = vmatmul.mubr.msk.f32.gmra.mrb[12].mxu0 %vm922_vm1, %v3524_v36 }
 0x8de   : > { %v3527_v40 = vpop.f32.mrb[48].mxu1 }
 0x8df   : > { %v2253_v42 = vpop.f32.mrb[49].mxu1 }
 0x8e0   : > { %3539 = vmatprep.mubr.msk.f32.mxu0 %vm922_vm1, %v2253_v42 }
 0x8e1   : > { %3540 = vmatmul.mubr.msk.f32.gmra.mrb[14].mxu0 %vm922_vm1, %v3527_v40 }
 0x915   : > { %v3530_v44 = vpop.f32.mrb[50].mxu1 }
 0x916   : > { %v2263_v46 = vpop.f32.mrb[51].mxu1 }
 0x917   : > { %3542 = vmatprep.mubr.msk.f32.mxu0 %vm922_vm1, %v2263_v46 }
 0x918   : > { %3543 = vmatmul.mubr.msk.f32.gmra.mrb[16].mxu0 %vm922_vm1, %v3530_v44 }
 0x919   : > { %v3551_v48 = vpop.f32.mrb[52].mxu1 }
 0x91a   : > { %v2515_v11 = vpop.f32.mrb[53].mxu1  ;;  %v2557_v14 = vsel %vm1058_vm3, %v3551_v48, -inf }
 0x91b   : > { %2558 = vmax.xlane.f32.xlu0 %v2557_v14  ;;  %v2554_v50 = vsel %vm1058_vm3, %v2515_v11, -inf }
 0x91c   : > { %2555 = vmax.xlane.f32.xlu1 %v2554_v50 }
 0x91d   : > { %v3554_v15 = vpop.f32.mrb[54].mxu1 }
 0x91e   : > { %v2525_v51 = vpop.f32.mrb[55].mxu1  ;;  %v2563_v58 = vsel %vm1058_vm3, %v3554_v15, -inf }
 0x91f   : > { %v2560_v52 = vsel %vm1058_vm3, %v2525_v51, -inf }
 0x920   : > { %2561 = vmax.xlane.f32.xlu0 %v2560_v52 }
 0x921   : > { %v3557_v53 = vpop.f32.mrb[56].mxu1 }
 0x922   : > { %v2535_v12 = vpop.f32.mrb[57].mxu1  ;;  %v2569_v5 = vsel %vm1058_vm3, %v3557_v53, -inf }
 0x923   : > { %v2566_v0 = vsel %vm1058_vm3, %v2535_v12, -inf }
 0x924   : > { %2564 = vmax.xlane.f32.xlu0 %v2563_v58  ;;  %2567 = vmax.xlane.f32.xlu1 %v2566_v0 }
 0x925   : > { %v3560_v16 = vpop.f32.mrb[58].mxu1 }
 0x926   : > { %v2545_v17 = vpop.f32.mrb[59].mxu1  ;;  %v2575_v54 = vsel %vm1058_vm3, %v3560_v16, -inf }
 0x927   : > { %v2572_v18 = vsel %vm1058_vm3, %v2545_v17, -inf }
 0x928   : > { %2570 = vmax.xlane.f32.xlu0 %v2569_v5  ;;  %2573 = vmax.xlane.f32.xlu1 %v2572_v18 }
 0x92c   : > { %2576 = vmax.xlane.f32.xlu0 %v2575_v54 }
 0x9a8   : > { %v2559_v35 = vpop.xlane.xlu0 %2558 }
 0x9a9   : > { %v2579_v19 = vsub.f32 %v3551_v48, %v2559_v35  ;;  %v2556_v28 = vpop.xlane.xlu1 %2555 }
 0x9aa   : > { %v2578_v32 = vsub.f32 %v2515_v11, %v2556_v28 }
 0x9ab   : > { %v2588_v39 = vmul.f32 1.442695, %v2579_v19 }
 0x9ac   : > { %v2586_v43 = vmul.f32 1.442695, %v2578_v32 }
 0x9ad   : > { %3868 = vpow2.f32 %v2588_v39  ;;  %v2562_v47 = vpop.xlane.xlu0 %2561 }
 0x9ae   : > { %3870 = vpow2.f32 %v2586_v43  ;;  %v2580_v22 = vsub.f32 %v2525_v51, %v2562_v47 }
 0x9b0   : > { %v2590_v57 = vmul.f32 1.442695, %v2580_v22 }
 0x9b1   : > { %v2565_v23 = vpop.xlane.xlu0 %2564  ;;  %v2568_v41 = vpop.xlane.xlu1 %2567 }
 0x9b2   : > { %3872 = vpow2.f32 %v2590_v57  ;;  %v2581_v59 = vsub.f32 %v3554_v15, %v2565_v23  ;;  %v2582_v45 = vsub.f32 %v2535_v12, %v2568_v41 }
 0x9b4   : > { %v2592_v49 = vmul.f32 1.442695, %v2581_v59  ;;  %v2594_v60 = vmul.f32 1.442695, %v2582_v45 }
 0x9b5   : > { %v2571_v62 = vpop.xlane.xlu0 %2570  ;;  %v2574_v1 = vpop.xlane.xlu1 %2573 }
 0x9b6   : > { %3874 = vpow2.f32 %v2592_v49  ;;  %v2583_v2 = vsub.f32 %v3557_v53, %v2571_v62  ;;  %v2584_v7 = vsub.f32 %v2545_v17, %v2574_v1  ;;  %v921_v53 = vld [vmem:[%s4574_s9 + $0x18] sm:$0xff]  ;;  %v3166_v49 = vld [vmem:[%s4575_s10] ss:$0 sm:$0xff] }
 0x9b7   : > { %v3869_v3 = vpop.eup %3868  ;;  %3876 = vpow2.f32 %v2594_v60 }
 0x9b8   : > { %v3871_v9 = vpop.eup %3870  ;;  %v2596_v6 = vmul.f32 1.442695, %v2583_v2  ;;  %v2598_v13 = vmul.f32 1.442695, %v2584_v7  ;;  %v2605_v56 = vsel %vm1058_vm3, %v3869_v3, 0.0 }
 0x9b9   : > { %2606 = vadd.xlane.f32.xlu0 %v2605_v56  ;;  %v2577_v55 = vpop.xlane.xlu0 %2576  ;;  %v2602_v10 = vsel %vm1058_vm3, %v3871_v9, 0.0 }
 0x9ba   : > { %3878 = vpow2.f32 %v2596_v6  ;;  %v2585_v26 = vsub.f32 %v3560_v16, %v2577_v55  ;;  %2603 = vadd.xlane.f32.xlu1 %v2602_v10 }
 0x9bb   : > { %3880 = vpow2.f32 %v2598_v13 }
 0x9bc   : > { %v3873_v61 = vpop.eup %3872  ;;  %v2600_v20 = vmul.f32 1.442695, %v2585_v26 }
 0x9bd   : > { %v2608_v21 = vsel %vm1058_vm3, %v3873_v61, 0.0 }
 0x9be   : > { %3882 = vpow2.f32 %v2600_v20  ;;  %2609 = vadd.xlane.f32.xlu1 %v2608_v21 }
 0x9c0   : > { %v3875_v24 = vpop.eup %3874 }
 0x9c1   : > { %v3877_v25 = vpop.eup %3876  ;;  %v2611_v4 = vsel %vm1058_vm3, %v3875_v24, 0.0 }
 0x9c2   : > { %2612 = vadd.xlane.f32.xlu0 %v2611_v4  ;;  %v2614_v30 = vsel %vm1058_vm3, %v3877_v25, 0.0 }
 0x9c3   : > { %2615 = vadd.xlane.f32.xlu1 %v2614_v30 }
 0x9c4   : > { %v3879_v27 = vpop.eup %3878 }
 0x9c5   : > { %v3881_v63 = vpop.eup %3880  ;;  %v2617_v31 = vsel %vm1058_vm3, %v3879_v27, 0.0 }
 0x9c6   : > { %2618 = vadd.xlane.f32.xlu0 %v2617_v31  ;;  %v2620_v33 = vsel %vm1058_vm3, %v3881_v63, 0.0 }
 0x9c7   : > { %2621 = vadd.xlane.f32.xlu1 %v2620_v33 }
 0x9c8   : > { %v3883_v34 = vpop.eup %3882 }
 0x9c9   : > { %v2623_v8 = vsel %vm1058_vm3, %v3883_v34, 0.0 }
 0x9ca   : > { %2624 = vadd.xlane.f32.xlu0 %v2623_v8 }
 0x9d8   : > { %3764 = vrot.lane.b32.xlu1 %v4152_v37, %s3926_s23 }
 0xa46   : > { %v2607_v36 = vpop.xlane.xlu0 %2606 }
 0xa47   : > { %v2604_v29 = vpop.xlane.xlu1 %2603 }
 0xa48   : > { %3884 = vrcp.f32 %v2604_v29 }
 0xa49   : > { %3886 = vrcp.f32 %v2607_v36 }
 0xa4b   : > { %v2610_v38 = vpop.xlane.xlu1 %2609 }
 0xa4c   : > { %3888 = vrcp.f32 %v2610_v38 }
 0xa4f   : > { %v2613_v40 = vpop.xlane.xlu0 %2612 }
 0xa50   : > { %v2616_v42 = vpop.xlane.xlu1 %2615  ;;  %3890 = vrcp.f32 %v2613_v40 }
 0xa51   : > { %3892 = vrcp.f32 %v2616_v42 }
 0xa52   : > { %v3885_v44 = vpop.eup %3884 }
 0xa53   : > { %v2634_v46 = vmul.f32 %v3885_v44, %v3871_v9  ;;  %v2619_v11 = vpop.xlane.xlu0 %2618  ;;  %v3887_v52 = vpop.eup %3886 }
 0xa54   : > { %v2622_v48 = vpop.xlane.xlu1 %2621  ;;  %3894 = vrcp.f32 %v2619_v11  ;;  %v2635_v58 = vmul.f32 %v3887_v52, %v3869_v3 }
 0xa55   : > { %3565 = vmatprep.mubr.msk.f32.mxu0 %vm1058_vm3, %v2634_v46  ;;  %3896 = vrcp.f32 %v2622_v48 }
 0xa56   : > { %v3889_v12 = vpop.eup %3888 }
 0xa57   : > { %v2625_v37 = vpop.xlane.xlu0 %2624  ;;  %v2636_v16 = vmul.f32 %v3889_v12, %v3873_v61 }
 0xa58   : > { %v3765_v14 = vpop.permute.xlu1 %3764  ;;  %3898 = vrcp.f32 %v2625_v37 }
 0xa59   : > { %v3767_v50 = vunpack.i.h.bf16 %v3765_v14  ;;  %v3766_v15 = vunpack.i.l.bf16 %v3765_v14 }
 0xa5a   : > { %v3891_v0 = vpop.eup %3890 }
 0xa5b   : > { %v3683_v51 = vpack.c.bf16 %v3767_v50, %v3766_v15  ;;  %v3893_v17 = vpop.eup %3892  ;;  %v2637_v5 = vmul.f32 %v3891_v0, %v3875_v24 }
 0xa5c   : > { %v2638_v54 = vmul.f32 %v3893_v17, %v3877_v25 }
 0xa5d   : > { %3684 = vmatprep.subr.bf16.mxu0 %v3683_v51 }
 0xa5e   : > { %3686 = vmatpush3.bf16.msra.mxu0 %v3683_v51  ;;  %v3895_v18 = vpop.eup %3894 }
 0xa5f   : > { %3577 = vmatprep.subr.mxu0 %v921_v53  ;;  %v3897_v35 = vpop.eup %3896  ;;  %v2639_v19 = vmul.f32 %v3895_v18, %v3879_v27 }
 0xa60   : > { %v2640_v32 = vmul.f32 %v3897_v35, %v3881_v63 }
 0xa61   : > { %3566 = vmatmul.mubr.msk.f32.vlgmr.msra.gmra.mrb[18].mxu0 %vm1058_vm3, %v2635_v58 }
 0xa62   : > { %3568 = vmatprep.mubr.msk.f32.mxu0 %vm1058_vm3, %v2636_v16  ;;  %3578 = vmatpush3.msra.mxu0 %v921_v53  ;;  %v3899_v28 = vpop.eup %3898 }
 0xa63   : > { %v2641_v39 = vmul.f32 %v3899_v28, %v3883_v34 }
 0xa65   : > { %3569 = vmatmul.mubr.msk.f32.gmra.mrb[20].mxu0 %vm1058_vm3, %v2637_v5 }
 0xa66   : > { %3571 = vmatprep.mubr.msk.f32.mxu0 %vm1058_vm3, %v2638_v54 }
 0xa69   : > { %3572 = vmatmul.mubr.msk.f32.gmra.mrb[22].mxu0 %vm1058_vm3, %v2639_v19 }
 0xa6a   : > { %3574 = vmatprep.mubr.msk.f32.mxu0 %vm1058_vm3, %v2640_v32 }
 0xa6d   : > { %3575 = vmatmul.mubr.msk.f32.gmra.mrb[24].mxu0 %vm1058_vm3, %v2641_v39 }
 0xb34   : > { %v3567_v43 = vpop.f32.mrb[18].mxu0 }
 0xb35   : > { %v2738_v47 = vpop.f32.mrb[19].mxu0 }
 0xb36   : > { %3579 = vmatprep.mubr.msk.f32.mxu0 %vm922_vm1, %v2738_v47 }
 0xb37   : > { %3580 = vmatmul.mubr.msk.f32.vlgmr.msra.gmra.mrb[10].mxu0 %vm922_vm1, %v3567_v43 }
 0xb38   : > { %v3570_v22 = vpop.f32.mrb[20].mxu0 }
 0xb39   : > { %v2748_v57 = vpop.f32.mrb[21].mxu0 }
 0xb3a   : > { %3582 = vmatprep.mubr.msk.f32.mxu0 %vm922_vm1, %v2748_v57 }
 0xb3b   : > { %3583 = vmatmul.mubr.msk.f32.gmra.mrb[12].mxu0 %vm922_vm1, %v3570_v22 }
 0xb3c   : > { %v3573_v23 = vpop.f32.mrb[22].mxu0 }
 0xb3d   : > { %v2758_v41 = vpop.f32.mrb[23].mxu0 }
 0xb3e   : > { %3585 = vmatprep.mubr.msk.f32.mxu0 %vm922_vm1, %v2758_v41 }
 0xb3f   : > { %3586 = vmatmul.mubr.msk.f32.gmra.mrb[14].mxu0 %vm922_vm1, %v3573_v23 }
 0xb40   : > { %v3576_v59 = vpop.f32.mrb[24].mxu0 }
 0xb41   : > { %v2768_v45 = vpop.f32.mrb[25].mxu0 }
 0xb42   : > { %3588 = vmatprep.mubr.msk.f32.mxu0 %vm922_vm1, %v2768_v45 }
 0xb43   : > { %3589 = vmatmul.mubr.msk.f32.gmra.mrb[16].mxu0 %vm922_vm1, %v3576_v59 }
 0xc0a   : > { %v3581_v60 = vpop.f32.mrb[10].mxu0 }
 0xc0b   : > { %v2922_v62 = vadd.f32 %v3581_v60, %v3166_v49  ;;  %v2867_v1 = vpop.f32.mrb[11].mxu0 }
 0xc0c   : > { %v2921_v2 = vadd.f32 %v3166_v49, %v2867_v1 }
 0xc0d   : > { %2930 = vst.msk [vmem:[%s444_s13 + $0x8] sm:$0xff] %vm550_vm0, %v2922_v62 }
 0xc0e   : > { %2929 = vst.msk [vmem:[%s444_s13] sm:$0xff] %vm550_vm0, %v2921_v2  ;;  %v3584_v7 = vpop.f32.mrb[12].mxu0 }
 0xc0f   : > { %v2924_v3 = vadd.f32 %v3584_v7, %v3166_v49  ;;  %v2877_v9 = vpop.f32.mrb[13].mxu0 }
 0xc10   : > { %v2923_v6 = vadd.f32 %v3166_v49, %v2877_v9 }
 0xc11   : > { %2932 = vst.msk [vmem:[%s444_s13 + $0x18] sm:$0xff] %vm550_vm0, %v2924_v3 }
 0xc12   : > { %2931 = vst.msk [vmem:[%s444_s13 + $0x10] sm:$0xff] %vm550_vm0, %v2923_v6  ;;  %v3587_v13 = vpop.f32.mrb[14].mxu0 }
 0xc13   : > { %v2926_v56 = vadd.f32 %v3587_v13, %v3166_v49  ;;  %v2887_v55 = vpop.f32.mrb[15].mxu0 }
 0xc14   : > { %v2925_v10 = vadd.f32 %v3166_v49, %v2887_v55 }
 0xc15   : > { %2934 = vst.msk [vmem:[%s444_s13 + $0x28] sm:$0xff] %vm550_vm0, %v2926_v56 }
 0xc16   : > { %2933 = vst.msk [vmem:[%s444_s13 + $0x20] sm:$0xff] %vm550_vm0, %v2925_v10  ;;  %v3590_v26 = vpop.f32.mrb[16].mxu0 }
 0xc17   : > { %v2928_v61 = vadd.f32 %v3590_v26, %v3166_v49  ;;  %v2897_v20 = vpop.f32.mrb[17].mxu0 }
 0xc18   : > { %v2927_v21 = vadd.f32 %v3166_v49, %v2897_v20 }
 0xc19   : > { %2936 = vst.msk [vmem:[%s444_s13 + $0x38] sm:$0xff] %vm550_vm0, %v2928_v61 }
 0xc1a   : > { %2935 = vst.msk [vmem:[%s444_s13 + $0x30] sm:$0xff] %vm550_vm0, %v2927_v21 }
 0xc1b PF: > { %s21_s19 = sadd.s32 1, %s3922_s19   ;;  %s4579_s17 = smov %s3918_s18 }
 0xc1c   : > { %p18_p5 = scmp.ge.s32.totalorder %s21_s19, 4   ;;  %s4580_s18 = smov %s4582_s20 }
 0xc1e   :  { %20 = sbr.rel (!%p18_p5) target bundleno = 2 (0x2), region = 101 }

</bundles_post_ra>
